<compile_context>
chip_gen: v5e
topology: v5e:2x2
jax: 0.10.0
libtpu: 0.0.40
codegen_flags: <defaults>
</compile_context>

<pallas_src>
import jax
import jax.numpy as jnp
from jax import lax
from jax.experimental import pallas as pl
from jax.experimental.pallas import tpu as pltpu

DROP_P = 0.25                      # F.dropout(p=0.25), training=True
SCALE = 1.0 / 0.5                  # qk.div(0.5) == qk * 2.0
KEEP_THRESH = 64                   # keep iff uint8 bits >= 64  ->  P(keep) = 192/256 = 0.75
KEEP_RESCALE = 1.0 / (1.0 - DROP_P)


def _attn_dropout_kernel(q_ref, k_ref, v_ref, bits_ref, o_ref):
    # q: (BH, Sq, D)   k, v: (BH, S, D)   bits: (BH, Sq, S) uint8   o: (BH, Sq, D)
    # Fold the 1/0.5 scale into q (fewer elements than the (Sq, S) score tile).
    q = q_ref[...] * SCALE
    k = k_ref[...]
    v = v_ref[...]

    # scores = (q * 2) @ k^T, contracting over D (no explicit transpose of K).
    s = lax.dot_general(
        q, k,
        dimension_numbers=(((2,), (2,)), ((0,), (0,))),
        preferred_element_type=jnp.float32)                      # (BH, Sq, S)

    # Numerically-stable softmax numerator + row sums (normalization deferred).
    m = jnp.max(s, axis=-1, keepdims=True)
    p = jnp.exp(s - m)
    denom = jnp.sum(p, axis=-1, keepdims=True)                   # (BH, Sq, 1)

    # Dropout keep-mask from uint8 bits (integer compare, no float RNG math).
    keep = bits_ref[...].astype(jnp.int32) >= KEEP_THRESH        # (BH, Sq, S)
    masked = jnp.where(keep, p, 0.0)                             # (BH, Sq, S)

    # output = dropout(softmax(qk)) @ v, with the row reciprocal and the
    # dropout 1/(1-p) rescale applied AFTER the contraction (on the smaller
    # (Sq, D) tile) — they commute with the sum over keys.
    out = lax.dot_general(
        masked.astype(v.dtype), v,
        dimension_numbers=(((2,), (1,)), ((0,), (0,))),
        preferred_element_type=jnp.float32)                      # (BH, Sq, D)

    row_scale = KEEP_RESCALE / denom                             # (BH, Sq, 1)
    o_ref[...] = (out * row_scale).astype(o_ref.dtype)


@jax.jit
def attention_dropout(x1, x2, x3, key):
    B, H, S, D = x1.shape
    BH = B * H
    q = x1.reshape(BH, S, D)
    k = x2.reshape(BH, S, D)
    v = x3.reshape(BH, S, D)

    # One bulk draw of uint8 random bits for all heads (1 byte per score elem).
    bits = jax.random.bits(key, (BH, S, S), dtype=jnp.uint8)

    # 2-way split over query rows: lets the second TensorCore on v7x do half
    # the work; on v5e/v6e it is just two sequential grid steps.
    n_row_blocks = 2 if (S % 2 == 0 and (S // 2) % 32 == 0) else 1
    sq = S // n_row_blocks

    grid_spec = pltpu.PrefetchScalarGridSpec(
        num_scalar_prefetch=0,
        grid=(n_row_blocks,),
        in_specs=[
            pl.BlockSpec((BH, sq, D), lambda i: (0, i, 0)),   # q rows
            pl.BlockSpec((BH, S, D), lambda i: (0, 0, 0)),    # k (resident)
            pl.BlockSpec((BH, S, D), lambda i: (0, 0, 0)),    # v (resident)
            pl.BlockSpec((BH, sq, S), lambda i: (0, i, 0)),   # dropout bits rows
        ],
        out_specs=pl.BlockSpec((BH, sq, D), lambda i: (0, i, 0)),
    )

    out = pl.pallas_call(
        _attn_dropout_kernel,
        out_shape=jax.ShapeDtypeStruct((BH, S, D), x1.dtype),
        grid_spec=grid_spec,
        compiler_params=pltpu.CompilerParams(
            dimension_semantics=("parallel",)),
    )(q, k, v, bits)
    return out.reshape(B, H, S, D)


if __name__ == "__main__":
    root = jax.random.PRNGKey(0)
    k1, k2, k3, kdrop = jax.random.split(root, 4)
    shape = (1, 3, 128, 64)
    x1 = jax.random.normal(k1, shape, dtype=jnp.float32)
    x2 = jax.random.normal(k2, shape, dtype=jnp.float32)
    x3 = jax.random.normal(k3, shape, dtype=jnp.float32)

    out = attention_dropout(x1, x2, x3, kdrop)
    out = jax.block_until_ready(out)

    assert out.shape == shape and out.dtype == jnp.float32
    assert bool(jnp.all(jnp.isfinite(out)))
    print("KERNEL_OK")
</pallas_src>

<mosaic_0001>
module attributes {stable_mosaic.version = 11 : i64} {
  func.func @_attn_dropout_kernel(%arg0: i32, %arg1: memref<3x64x64xf32, #tpu.memory_space<vmem>>, %arg2: memref<3x128x64xf32, #tpu.memory_space<vmem>>, %arg3: memref<3x128x64xf32, #tpu.memory_space<vmem>>, %arg4: memref<3x64x128xi8, #tpu.memory_space<vmem>>, %arg5: memref<3x64x64xf32, #tpu.memory_space<vmem>>) attributes {dimension_semantics = [#tpu.dimension_semantics<parallel>], iteration_bounds = array<i64: 2>, scalar_prefetch = 0 : i64, scratch_operands = 0 : i64, tpu.core_type = #tpu.core_type<tc>, window_params = [{transform_indices = @transform_0, window_bounds = array<i64: 3, 64, 64>}, {pipeline_mode = #tpu.pipeline_mode<synchronous>, transform_indices = @transform_1, window_bounds = array<i64: 3, 128, 64>}, {pipeline_mode = #tpu.pipeline_mode<synchronous>, transform_indices = @transform_2, window_bounds = array<i64: 3, 128, 64>}, {transform_indices = @transform_3, window_bounds = array<i64: 3, 64, 128>}, {transform_indices = @transform_4, window_bounds = array<i64: 3, 64, 64>}]} {
    %c0 = arith.constant 0 : index
    %c0_0 = arith.constant 0 : index
    %c0_1 = arith.constant 0 : index
    %0 = vector.load %arg1[%c0, %c0_0, %c0_1] : memref<3x64x64xf32, #tpu.memory_space<vmem>>, vector<3x64x64xf32>
    %cst = arith.constant 2.000000e+00 : f32
    %1 = vector.broadcast %cst : f32 to vector<3x64x64xf32>
    %2 = arith.mulf %0, %1 : vector<3x64x64xf32>
    %c0_2 = arith.constant 0 : index
    %c0_3 = arith.constant 0 : index
    %c0_4 = arith.constant 0 : index
    %3 = vector.load %arg2[%c0_2, %c0_3, %c0_4] : memref<3x128x64xf32, #tpu.memory_space<vmem>>, vector<3x128x64xf32>
    %c0_5 = arith.constant 0 : index
    %c0_6 = arith.constant 0 : index
    %c0_7 = arith.constant 0 : index
    %4 = vector.load %arg3[%c0_5, %c0_6, %c0_7] : memref<3x128x64xf32, #tpu.memory_space<vmem>>, vector<3x128x64xf32>
    %cst_8 = arith.constant dense<0.000000e+00> : vector<3x64x128xf32>
    %5 = tpu.matmul %2, %3, %cst_8 {dimension_numbers = #tpu.dot_dimension_numbers<[2], [2], [1], [1], [0, 0, 0, 1, 1, 1], [0], [0]>} : vector<3x64x64xf32>, vector<3x128x64xf32>, vector<3x64x128xf32> -> vector<3x64x128xf32>
    %cst_9 = arith.constant dense<0xFF800000> : vector<3x64xf32>
    %6 = vector.multi_reduction <maximumf>, %5, %cst_9 [2] : vector<3x64x128xf32> to vector<3x64xf32>
    %7 = vector.shape_cast %6 : vector<3x64xf32> to vector<3x64x1xf32>
    %8 = vector.broadcast %7 : vector<3x64x1xf32> to vector<3x64x128xf32>
    %9 = arith.subf %5, %8 : vector<3x64x128xf32>
    %10 = math.exp %9 : vector<3x64x128xf32>
    %cst_10 = arith.constant dense<0.000000e+00> : vector<3x64xf32>
    %11 = vector.multi_reduction <add>, %10, %cst_10 [2] : vector<3x64x128xf32> to vector<3x64xf32>
    %12 = vector.shape_cast %11 : vector<3x64xf32> to vector<3x64x1xf32>
    %c0_11 = arith.constant 0 : index
    %c0_12 = arith.constant 0 : index
    %c0_13 = arith.constant 0 : index
    %13 = vector.load %arg4[%c0_11, %c0_12, %c0_13] : memref<3x64x128xi8, #tpu.memory_space<vmem>>, vector<3x64x128xi8>
    %14 = arith.extui %13 : vector<3x64x128xi8> to vector<3x64x128xi32>
    %c64_i32 = arith.constant 64 : i32
    %15 = vector.broadcast %c64_i32 : i32 to vector<3x64x128xi32>
    %16 = arith.cmpi sge, %14, %15 : vector<3x64x128xi32>
    %cst_14 = arith.constant 0.000000e+00 : f32
    %17 = vector.broadcast %cst_14 : f32 to vector<3x64x128xf32>
    %18 = arith.select %16, %10, %17 : vector<3x64x128xi1>, vector<3x64x128xf32>
    %cst_15 = arith.constant dense<0.000000e+00> : vector<3x64x64xf32>
    %19 = tpu.matmul %18, %4, %cst_15 {dimension_numbers = #tpu.dot_dimension_numbers<[2], [1], [1], [2], [0, 0, 0, 1, 1, 2], [0], [0]>} : vector<3x64x128xf32>, vector<3x128x64xf32>, vector<3x64x64xf32> -> vector<3x64x64xf32>
    %cst_16 = arith.constant 1.33333337 : f32
    %20 = vector.broadcast %cst_16 : f32 to vector<3x64x1xf32>
    %21 = arith.divf %20, %12 : vector<3x64x1xf32>
    %22 = vector.broadcast %21 : vector<3x64x1xf32> to vector<3x64x64xf32>
    %23 = arith.mulf %19, %22 : vector<3x64x64xf32>
    %c0_17 = arith.constant 0 : index
    %c0_18 = arith.constant 0 : index
    %c0_19 = arith.constant 0 : index
    %24 = vector.load %arg5[%c0_17, %c0_18, %c0_19] : memref<3x64x64xf32, #tpu.memory_space<vmem>>, vector<3x64x64xf32>
    tpu.vector_store %arg5[%c0_17, %c0_18, %c0_19], %23 {strides = array<i32>} : memref<3x64x64xf32, #tpu.memory_space<vmem>>, vector<3x64x64xf32>,
    return
  }
  func.func @transform_0(%arg0: i32) -> (i32, i32, i32) {
    %c0_i32 = arith.constant 0 : i32
    %c0_i32_0 = arith.constant 0 : i32
    %c0_i32_1 = arith.constant 0 : i32
    return %c0_i32, %arg0, %c0_i32_0 : i32, i32, i32
  }
  func.func @transform_1(%arg0: i32) -> (i32, i32, i32) {
    %c0_i32 = arith.constant 0 : i32
    %c0_i32_0 = arith.constant 0 : i32
    %c0_i32_1 = arith.constant 0 : i32
    %c0_i32_2 = arith.constant 0 : i32
    return %c0_i32, %c0_i32_0, %c0_i32_1 : i32, i32, i32
  }
  func.func @transform_2(%arg0: i32) -> (i32, i32, i32) {
    %c0_i32 = arith.constant 0 : i32
    %c0_i32_0 = arith.constant 0 : i32
    %c0_i32_1 = arith.constant 0 : i32
    %c0_i32_2 = arith.constant 0 : i32
    return %c0_i32, %c0_i32_0, %c0_i32_1 : i32, i32, i32
  }
  func.func @transform_3(%arg0: i32) -> (i32, i32, i32) {
    %c0_i32 = arith.constant 0 : i32
    %c0_i32_0 = arith.constant 0 : i32
    %c0_i32_1 = arith.constant 0 : i32
    return %c0_i32, %arg0, %c0_i32_0 : i32, i32, i32
  }
  func.func @transform_4(%arg0: i32) -> (i32, i32, i32) {
    %c0_i32 = arith.constant 0 : i32
    %c0_i32_0 = arith.constant 0 : i32
    %c0_i32_1 = arith.constant 0 : i32
    return %c0_i32, %arg0, %c0_i32_0 : i32, i32, i32
  }
}

</mosaic_0001>

<bundles_post_ra>
// kernel: attention_dropout.1
= control target key start
LH: loop header
LB: loop body
LE: loop exit
PB: predicated region body
PF: predicated region fallthrough
CT: control target
= control target key end

     0   :  { %s2210_s15 = smov 0   ;;  %s2212_s16 = smov 0   ;;  %s3321_s0 = inlined_call_operand.vmem [shape: f32[3,128,64], index: 0, kind: input, shape index: {}]   ;;  %s3322_s1 = inlined_call_operand.vmem [shape: f32[3,128,64], index: 1, kind: input, shape index: {}]   ;;  %s3323_s2 = inlined_call_operand.vmem [shape: f32[3,128,64], index: 2, kind: input, shape index: {}]   ;;  %s3324_s3 = inlined_call_operand.vmem [shape: u8[3,128,128], index: 3, kind: input, shape index: {}]   ;;  %s3325_s4 = inlined_call_operand.vmem [shape: f32[3,128,64], index: 4, kind: output, shape index: {}]  }
   0x1   :  { %s2214_s17 = smov 0  }
   0x2 LB: > { %s1893_s18 = sadd.s32 4294967295, %s2183_s17   ;;  %s2227_s19 = sadd.s32 1, %s2183_s17   ;;  %s2183_s17 = sphi %s2214_s17, %s3360_s17   ;;  %s2179_s16 = sphi %s2212_s16, %s3359_s16   ;;  %s2175_s15 = sphi %s2210_s15, %s3358_s15  }
   0x3   : > { %s18_s20 = ssub.s32 %s2183_s17, %s2227_s19  ;;  %s21_s21 = sadd.s32 1, %s2179_s16 }
   0x4   : > { %p19_p0 = scmp.eq.s32.totalorder %s18_s20, 0  ;;  %p28_p1 = scmp.ne.s32.totalorder %s2179_s16, %s2175_s15 }
   0x5   : > { %p29_p2 = scmp.eq.s32.totalorder %s2183_s17, 0  ;;  %p126_p3 = scmp.eq.s32.totalorder %s1893_s18, 1 }
   0x6   : > { %s2238_s22 = scalar_select %p19_p0, %s2179_s16, %s21_s21  }
   0x7   : > { %p2240_p4 = por %p29_p2, %p28_p1  ;;  %p2244_p5 = por %p126_p3, %p28_p1 }
   0x8   : > { %p1896_p6 = scmp.ge.s32.totalorder %s2183_s17, 2 }
   0xa   : > { %154 = sbr.rel (%p1896_p6) target bundleno = 53 (0x35), region = 24 }
   0xf   : > { %157 = sbr.rel (!%p2240_p4) target bundleno = 43 (0x2b), region = 28  ;;  %s159_s25 = sand.u32 (%p2240_p4), 1, %s2179_s16  }
  0x10   : > { %s2002_s26 = sshll.u32 (%p2240_p4), %s2183_s17, 6  ;;  %s2037_s27 = smul.u32 (%p2240_p4), 192, %s159_s25 }
  0x11   : > { %s2256_s30 = scalar_lea.vmem (%p2240_p4), %s3321_s0, %s2002_s26 }
  0x12   : > { %v239_v0 = vld [vmem:[%s2256_s30] sm:$0xff] (%p2240_p4)  ;;  %v241_v1 = vld [vmem:[%s2256_s30 + $0x8] sm:$0xff] (%p2240_p4)  ;;  %v243_v2 = vld [vmem:[%s2256_s30 + $0x10] sm:$0xff] (%p2240_p4)  ;;  %s2261_s5 = scalar_lea.vmem (%p2240_p4), [#allocation2], %s2037_s27 }
  0x13   : > { %240 = vst [vmem:[%s2261_s5] sm:$0xff] (%p2240_p4), %v239_v0  ;;  %v245_v3 = vld [vmem:[%s2256_s30 + $0x18] sm:$0xff] (%p2240_p4)  ;;  %v247_v4 = vld [vmem:[%s2256_s30 + $0x20] sm:$0xff] (%p2240_p4)  ;;  %v249_v5 = vld [vmem:[%s2256_s30 + $0x28] sm:$0xff] (%p2240_p4) }
  0x14   : > { %242 = vst [vmem:[%s2261_s5 + $0x8] sm:$0xff] %v241_v1  ;;  %v251_v6 = vld [vmem:[%s2256_s30 + $0x30] sm:$0xff]  ;;  %v253_v7 = vld [vmem:[%s2256_s30 + $0x38] sm:$0xff]  ;;  %v255_v8 = vld [vmem:[%s2256_s30 + $0x80] sm:$0xff] }
  0x15   : > { %244 = vst [vmem:[%s2261_s5 + $0x10] sm:$0xff] %v243_v2  ;;  %v257_v9 = vld [vmem:[%s2256_s30 + $0x88] sm:$0xff]  ;;  %v259_v10 = vld [vmem:[%s2256_s30 + $0x90] sm:$0xff]  ;;  %v261_v11 = vld [vmem:[%s2256_s30 + $0x98] sm:$0xff] }
  0x16   : > { %246 = vst [vmem:[%s2261_s5 + $0x18] sm:$0xff] %v245_v3  ;;  %v263_v12 = vld [vmem:[%s2256_s30 + $0xa0] sm:$0xff]  ;;  %v265_v13 = vld [vmem:[%s2256_s30 + $0xa8] sm:$0xff]  ;;  %v267_v14 = vld [vmem:[%s2256_s30 + $0xb0] sm:$0xff] }
  0x17   : > { %248 = vst [vmem:[%s2261_s5 + $0x20] sm:$0xff] %v247_v4  ;;  %v269_v15 = vld [vmem:[%s2256_s30 + $0xb8] sm:$0xff]  ;;  %v271_v16 = vld [vmem:[%s2256_s30 + $0x100] sm:$0xff]  ;;  %v273_v17 = vld [vmem:[%s2256_s30 + $0x108] sm:$0xff] }
  0x18   : > { %250 = vst [vmem:[%s2261_s5 + $0x28] sm:$0xff] %v249_v5  ;;  %v275_v18 = vld [vmem:[%s2256_s30 + $0x110] sm:$0xff]  ;;  %v277_v19 = vld [vmem:[%s2256_s30 + $0x118] sm:$0xff]  ;;  %v279_v20 = vld [vmem:[%s2256_s30 + $0x120] sm:$0xff] }
  0x19   : > { %252 = vst [vmem:[%s2261_s5 + $0x30] sm:$0xff] %v251_v6  ;;  %v281_v21 = vld [vmem:[%s2256_s30 + $0x128] sm:$0xff]  ;;  %v283_v22 = vld [vmem:[%s2256_s30 + $0x130] sm:$0xff]  ;;  %v285_v23 = vld [vmem:[%s2256_s30 + $0x138] sm:$0xff] }
  0x1a   : > { %254 = vst [vmem:[%s2261_s5 + $0x38] sm:$0xff] %v253_v7 }
  0x1b   : > { %256 = vst [vmem:[%s2261_s5 + $0x40] sm:$0xff] %v255_v8 }
  0x1c   : > { %258 = vst [vmem:[%s2261_s5 + $0x48] sm:$0xff] %v257_v9 }
  0x1d   : > { %260 = vst [vmem:[%s2261_s5 + $0x50] sm:$0xff] %v259_v10 }
  0x1e   : > { %262 = vst [vmem:[%s2261_s5 + $0x58] sm:$0xff] %v261_v11 }
  0x1f   : > { %264 = vst [vmem:[%s2261_s5 + $0x60] sm:$0xff] %v263_v12 }
  0x20   : > { %266 = vst [vmem:[%s2261_s5 + $0x68] sm:$0xff] %v265_v13 }
  0x21   : > { %268 = vst [vmem:[%s2261_s5 + $0x70] sm:$0xff] %v267_v14 }
  0x22   : > { %270 = vst [vmem:[%s2261_s5 + $0x78] sm:$0xff] %v269_v15 }
  0x23   : > { %272 = vst [vmem:[%s2261_s5 + $0x80] sm:$0xff] %v271_v16 }
  0x24   : > { %274 = vst [vmem:[%s2261_s5 + $0x88] sm:$0xff] %v273_v17 }
  0x25   : > { %276 = vst [vmem:[%s2261_s5 + $0x90] sm:$0xff] %v275_v18 }
  0x26   : > { %278 = vst [vmem:[%s2261_s5 + $0x98] sm:$0xff] %v277_v19 }
  0x27   : > { %280 = vst [vmem:[%s2261_s5 + $0xa0] sm:$0xff] %v279_v20 }
  0x28   : > { %282 = vst [vmem:[%s2261_s5 + $0xa8] sm:$0xff] %v281_v21 }
  0x29   : > { %284 = vst [vmem:[%s2261_s5 + $0xb0] sm:$0xff] %v283_v22 }
  0x2a   : > { %286 = vst [vmem:[%s2261_s5 + $0xb8] sm:$0xff] %v285_v23 }
  0x2b PF: > { %292 = sbr.rel (!%p2240_p4) target bundleno = 53 (0x35), region = 66  ;;  %s294_s6 = sand.u32 (%p2240_p4), 1, %s2179_s16  }
  0x2c   : > { %s2003_s7 = sshll.u32 (%p2240_p4), %s2183_s17, 4  ;;  %s2038_s8 = smul.u32 (%p2240_p4), 48, %s294_s6 }
  0x2d   : > { %s299_s11 = scalar_lea.vmem (%p2240_p4), %s3324_s3, %s2003_s7 }
  0x2e   : > { %v338_v24 = vld [vmem:[%s299_s11] sm:$0xff] (%p2240_p4)  ;;  %v340_v25 = vld [vmem:[%s299_s11 + $0x8] sm:$0xff] (%p2240_p4)  ;;  %s296_s12 = scalar_lea.vmem (%p2240_p4), [#allocation3], %s2038_s8 }
  0x2f   : > { %v342_v26 = vld [vmem:[%s299_s11 + $0x20] sm:$0xff] (%p2240_p4)  ;;  %339 = vst [vmem:[%s296_s12] sm:$0xff] (%p2240_p4), %v338_v24  ;;  %v344_v27 = vld [vmem:[%s299_s11 + $0x28] sm:$0xff] (%p2240_p4) }
  0x30   : > { %341 = vst [vmem:[%s296_s12 + $0x8] sm:$0xff] %v340_v25  ;;  %v346_v28 = vld [vmem:[%s299_s11 + $0x40] sm:$0xff]  ;;  %v348_v29 = vld [vmem:[%s299_s11 + $0x48] sm:$0xff] }
  0x31   : > { %343 = vst [vmem:[%s296_s12 + $0x10] sm:$0xff] %v342_v26 }
  0x32   : > { %345 = vst [vmem:[%s296_s12 + $0x18] sm:$0xff] %v344_v27 }
  0x33   : > { %347 = vst [vmem:[%s296_s12 + $0x20] sm:$0xff] %v346_v28 }
  0x34   : > { %349 = vst [vmem:[%s296_s12 + $0x28] sm:$0xff] %v348_v29 }
  0x35 PF: > { %p1901_p7 = scmp.ge.s32.totalorder %s2183_s17, 1  ;;  %p354_p8 = scmp.lt.s32.totalorder %s2183_s17, 3 }
  0x37   : > { %p355_p9 = pnand %p1901_p7, %p354_p8 }
  0x38   : > { %s361_s11 = sand.u32 (!%p355_p9), 1, %s2175_s15  }
  0x39   : > { %358 = sbr.rel (%p355_p9) target bundleno = 669 (0x29d), region = 104 }
  0x3a   : > { %s2477_s25 = smul.u32 (!%p355_p9), 192, %s361_s11 }
  0x3b   : > { %s2040_s21 = smul.u32 (!%p355_p9), 48, %s361_s11 }
  0x3c   : > { %s2498_s8 = scalar_lea.vmem (!%p355_p9), [#allocation2], %s2477_s25 }
  0x3d   : > { %s2690_s27 = scalar_lea.vmem (!%p355_p9), [#allocation3], %s2040_s21 }
  0x3e   : > { %v462_v30 = vld [vmem:[%s3322_s1 + $0x78] sm:$0xff]  ;;  %vm543_vm0 = vcmask 523264   ;;  %v461_v32 = vld [vmem:[%s3322_s1 + $0x70] sm:$0xff]  ;;  %v460_v36 = vld [vmem:[%s3322_s1 + $0x68] sm:$0xff] }
  0x3f   : > { %1902 = vmatpush.xpose.msk.msra.mxu0 %vm543_vm0, %v462_v30  ;;  %v494_v31 = vld [vmem:[%s3322_s1 + $0x178] sm:$0xff]  ;;  %v493_v33 = vld [vmem:[%s3322_s1 + $0x170] sm:$0xff]  ;;  %v492_v37 = vld [vmem:[%s3322_s1 + $0x168] sm:$0xff] }
  0x40   : > { %1950 = vmatpush.xpose.msk.msra.mxu2 %vm543_vm0, %v494_v31  ;;  %v478_v34 = vld [vmem:[%s3322_s1 + $0xf8] sm:$0xff]  ;;  %v477_v35 = vld [vmem:[%s3322_s1 + $0xf0] sm:$0xff]  ;;  %v476_v38 = vld [vmem:[%s3322_s1 + $0xe8] sm:$0xff] }
  0x41   : > { %1926 = vmatpush.xpose.msk.msra.mxu1 %vm543_vm0, %v478_v34  ;;  %v459_v39 = vld [vmem:[%s3322_s1 + $0x60] sm:$0xff]  ;;  %v458_v42 = vld [vmem:[%s3322_s1 + $0x58] sm:$0xff]  ;;  %v457_v45 = vld [vmem:[%s3322_s1 + $0x50] sm:$0xff] }
  0x42   : > { %v491_v40 = vld [vmem:[%s3322_s1 + $0x160] sm:$0xff]  ;;  %v490_v43 = vld [vmem:[%s3322_s1 + $0x158] sm:$0xff]  ;;  %v489_v46 = vld [vmem:[%s3322_s1 + $0x150] sm:$0xff] }
  0x43   : > { %1903 = vmatpush.xpose.msk.msra.mxu0 %vm543_vm0, %v461_v32  ;;  %v475_v41 = vld [vmem:[%s3322_s1 + $0xe0] sm:$0xff]  ;;  %v474_v44 = vld [vmem:[%s3322_s1 + $0xd8] sm:$0xff]  ;;  %v473_v47 = vld [vmem:[%s3322_s1 + $0xd0] sm:$0xff] }
  0x44   : > { %1951 = vmatpush.xpose.msk.msra.mxu2 %vm543_vm0, %v493_v33  ;;  %v456_v48 = vld [vmem:[%s3322_s1 + $0x48] sm:$0xff]  ;;  %v455_v51 = vld [vmem:[%s3322_s1 + $0x40] sm:$0xff]  ;;  %v454_v54 = vld [vmem:[%s3322_s1 + $0x38] sm:$0xff] }
  0x45   : > { %1927 = vmatpush.xpose.msk.msra.mxu1 %vm543_vm0, %v477_v35  ;;  %v488_v49 = vld [vmem:[%s3322_s1 + $0x148] sm:$0xff]  ;;  %v487_v52 = vld [vmem:[%s3322_s1 + $0x140] sm:$0xff]  ;;  %v486_v55 = vld [vmem:[%s3322_s1 + $0x138] sm:$0xff] }
  0x46   : > { %v472_v50 = vld [vmem:[%s3322_s1 + $0xc8] sm:$0xff]  ;;  %v471_v53 = vld [vmem:[%s3322_s1 + $0xc0] sm:$0xff]  ;;  %v470_v56 = vld [vmem:[%s3322_s1 + $0xb8] sm:$0xff] }
  0x47   : > { %1904 = vmatpush.xpose.msk.msra.mxu0 %vm543_vm0, %v460_v36  ;;  %v453_v57 = vld [vmem:[%s3322_s1 + $0x30] sm:$0xff]  ;;  %v452_v60 = vld [vmem:[%s3322_s1 + $0x28] sm:$0xff]  ;;  %v451_v63 = vld [vmem:[%s3322_s1 + $0x20] sm:$0xff] }
  0x48   : > { %1952 = vmatpush.xpose.msk.msra.mxu2 %vm543_vm0, %v492_v37  ;;  %v485_v58 = vld [vmem:[%s3322_s1 + $0x130] sm:$0xff]  ;;  %v484_v61 = vld [vmem:[%s3322_s1 + $0x128] sm:$0xff]  ;;  %v483_v0 = vld [vmem:[%s3322_s1 + $0x120] sm:$0xff] }
  0x49   : > { %1928 = vmatpush.xpose.msk.msra.mxu1 %vm543_vm0, %v476_v38  ;;  %v469_v59 = vld [vmem:[%s3322_s1 + $0xb0] sm:$0xff]  ;;  %v468_v62 = vld [vmem:[%s3322_s1 + $0xa8] sm:$0xff]  ;;  %v467_v1 = vld [vmem:[%s3322_s1 + $0xa0] sm:$0xff] }
  0x4a   : > { %v450_v2 = vld [vmem:[%s3322_s1 + $0x18] sm:$0xff]  ;;  %v449_v5 = vld [vmem:[%s3322_s1 + $0x10] sm:$0xff]  ;;  %v448_v8 = vld [vmem:[%s3322_s1 + $0x8] sm:$0xff] }
  0x4b   : > { %1905 = vmatpush.xpose.msk.msra.mxu0 %vm543_vm0, %v459_v39  ;;  %v482_v3 = vld [vmem:[%s3322_s1 + $0x118] sm:$0xff]  ;;  %v481_v6 = vld [vmem:[%s3322_s1 + $0x110] sm:$0xff]  ;;  %v480_v9 = vld [vmem:[%s3322_s1 + $0x108] sm:$0xff] }
  0x4c   : > { %1953 = vmatpush.xpose.msk.msra.mxu2 %vm543_vm0, %v491_v40  ;;  %v466_v4 = vld [vmem:[%s3322_s1 + $0x98] sm:$0xff]  ;;  %v465_v7 = vld [vmem:[%s3322_s1 + $0x90] sm:$0xff]  ;;  %v399_v10 = vld [vmem:[%s2498_s8] sm:$0xff] }
  0x4d   : > { %1929 = vmatpush.xpose.msk.msra.mxu1 %vm543_vm0, %v475_v41  ;;  %v464_v11 = vld [vmem:[%s3322_s1 + $0x88] sm:$0xff]  ;;  %v447_v12 = vld [vmem:[%s3322_s1] sm:$0xff]  ;;  %v423_v15 = vmul.f32 2.0, %v399_v10  ;;  %v401_v26 = vld [vmem:[%s2498_s8 + $0x10] sm:$0xff] }
  0x4e   : > { %v415_v13 = vld [vmem:[%s2498_s8 + $0x80] sm:$0xff]  ;;  %v400_v20 = vld [vmem:[%s2498_s8 + $0x8] sm:$0xff]  ;;  %v417_v27 = vld [vmem:[%s2498_s8 + $0x90] sm:$0xff]  ;;  %v425_v28 = vmul.f32 2.0, %v401_v26 }
  0x4f   : > { %1906 = vmatpush.xpose.msk.msra.mxu0 %vm543_vm0, %v458_v42  ;;  %v479_v14 = vld [vmem:[%s3322_s1 + $0x100] sm:$0xff]  ;;  %v439_v17 = vmul.f32 2.0, %v415_v13  ;;  %v416_v21 = vld [vmem:[%s2498_s8 + $0x88] sm:$0xff]  ;;  %v424_v22 = vmul.f32 2.0, %v400_v20  ;;  %v409_v29 = vld [vmem:[%s2498_s8 + $0x50] sm:$0xff]  ;;  %v441_v30 = vmul.f32 2.0, %v417_v27 }
  0x50   : > { %1954 = vmatpush.xpose.msk.msra.mxu2 %vm543_vm0, %v490_v43  ;;  %v407_v16 = vld [vmem:[%s2498_s8 + $0x40] sm:$0xff]  ;;  %v408_v23 = vld [vmem:[%s2498_s8 + $0x48] sm:$0xff]  ;;  %v440_v24 = vmul.f32 2.0, %v416_v21  ;;  %v433_v31 = vmul.f32 2.0, %v409_v29  ;;  %v402_v32 = vld [vmem:[%s2498_s8 + $0x18] sm:$0xff] }
  0x51   : > { %1930 = vmatpush.xpose.msk.msra.mxu1 %vm543_vm0, %v474_v44  ;;  %v463_v18 = vld [vmem:[%s3322_s1 + $0x80] sm:$0xff]  ;;  %v431_v19 = vmul.f32 2.0, %v407_v16  ;;  %v432_v25 = vmul.f32 2.0, %v408_v23  ;;  %v418_v33 = vld [vmem:[%s2498_s8 + $0x98] sm:$0xff]  ;;  %v426_v34 = vmul.f32 2.0, %v402_v32  ;;  %v404_v44 = vld [vmem:[%s2498_s8 + $0x28] sm:$0xff] }
  0x52   : > { %v410_v35 = vld [vmem:[%s2498_s8 + $0x58] sm:$0xff]  ;;  %v442_v36 = vmul.f32 2.0, %v418_v33  ;;  %v403_v38 = vld [vmem:[%s2498_s8 + $0x20] sm:$0xff]  ;;  %v508_v20 = vld [vmem:[%s3323_s2 + $0x68] sm:$0xff] }
  0x53   : > { %1907 = vmatpush.xpose.msk.msra.mxu0 %vm543_vm0, %v457_v45  ;;  %v434_v37 = vmul.f32 2.0, %v410_v35  ;;  %v419_v39 = vld [vmem:[%s2498_s8 + $0xa0] sm:$0xff]  ;;  %v427_v40 = vmul.f32 2.0, %v403_v38  ;;  %v420_v45 = vld [vmem:[%s2498_s8 + $0xa8] sm:$0xff]  ;;  %v502_v29 = vld [vmem:[%s3323_s2 + $0x38] sm:$0xff] }
  0x54   : > { %1955 = vmatpush.xpose.msk.msra.mxu2 %vm543_vm0, %v489_v46  ;;  %v411_v41 = vld [vmem:[%s2498_s8 + $0x60] sm:$0xff]  ;;  %v443_v42 = vmul.f32 2.0, %v419_v39  ;;  %v428_v46 = vmul.f32 2.0, %v404_v44  ;;  %v504_v26 = vld [vmem:[%s3323_s2 + $0x48] sm:$0xff]  ;;  %v497_v35 = vld [vmem:[%s3323_s2 + $0x10] sm:$0xff] }
  0x55   : > { %1931 = vmatpush.xpose.msk.msra.mxu1 %vm543_vm0, %v473_v47  ;;  %v435_v43 = vmul.f32 2.0, %v411_v41  ;;  %v412_v47 = vld [vmem:[%s2498_s8 + $0x68] sm:$0xff]  ;;  %v503_v27 = vld [vmem:[%s3323_s2 + $0x40] sm:$0xff]  ;;  %v526_v38 = vld [vmem:[%s3323_s2 + $0xf8] sm:$0xff] }
  0x56   : > { %v499_v33 = vld [vmem:[%s3323_s2 + $0x20] sm:$0xff] }
  0x57   : > { %1908 = vmatpush.xpose.msk.msra.mxu0 %vm543_vm0, %v456_v48  ;;  %v444_v48 = vmul.f32 2.0, %v420_v45  ;;  %v2693_v39 = vld [vmem:[%s2690_s27] sm:$0xff] }
  0x58   : > { %1956 = vmatpush.xpose.msk.msra.mxu2 %vm543_vm0, %v488_v49  ;;  %v436_v49 = vmul.f32 2.0, %v412_v47  ;;  %v525_v45 = vld [vmem:[%s3323_s2 + $0xf0] sm:$0xff] }
  0x59   : > { %1932 = vmatpush.xpose.msk.msra.mxu1 %vm543_vm0, %v472_v50  ;;  %v405_v50 = vld [vmem:[%s2498_s8 + $0x30] sm:$0xff] }
  0x5b   : > { %1909 = vmatpush.xpose.msk.msra.mxu0 %vm543_vm0, %v455_v51  ;;  %v421_v51 = vld [vmem:[%s2498_s8 + $0xb0] sm:$0xff] }
  0x5c   : > { %1957 = vmatpush.xpose.msk.msra.mxu2 %vm543_vm0, %v487_v52  ;;  %v429_v52 = vmul.f32 2.0, %v405_v50 }
  0x5d   : > { %1933 = vmatpush.xpose.msk.msra.mxu1 %vm543_vm0, %v471_v53  ;;  %v413_v53 = vld [vmem:[%s2498_s8 + $0x70] sm:$0xff] }
  0x5f   : > { %1910 = vmatpush.xpose.msk.msra.mxu0 %vm543_vm0, %v454_v54  ;;  %v445_v54 = vmul.f32 2.0, %v421_v51 }
  0x60   : > { %1958 = vmatpush.xpose.msk.msra.mxu2 %vm543_vm0, %v486_v55  ;;  %v437_v55 = vmul.f32 2.0, %v413_v53  ;;  %v523_v53 = vld [vmem:[%s3323_s2 + $0xe0] sm:$0xff] }
  0x61   : > { %1934 = vmatpush.xpose.msk.msra.mxu1 %vm543_vm0, %v470_v56  ;;  %v406_v56 = vld [vmem:[%s2498_s8 + $0x38] sm:$0xff] }
  0x63   : > { %1911 = vmatpush.xpose.msk.msra.mxu0 %vm543_vm0, %v453_v57  ;;  %v422_v57 = vld [vmem:[%s2498_s8 + $0xb8] sm:$0xff] }
  0x64   : > { %1959 = vmatpush.xpose.msk.msra.mxu2 %vm543_vm0, %v485_v58  ;;  %v430_v58 = vmul.f32 2.0, %v406_v56  ;;  %v541_v56 = vld [vmem:[%s3323_s2 + $0x170] sm:$0xff] }
  0x65   : > { %1935 = vmatpush.xpose.msk.msra.mxu1 %vm543_vm0, %v469_v59  ;;  %v414_v59 = vld [vmem:[%s2498_s8 + $0x78] sm:$0xff] }
  0x67   : > { %1912 = vmatpush.xpose.msk.msra.mxu0 %vm543_vm0, %v452_v60  ;;  %v446_v60 = vmul.f32 2.0, %v422_v57 }
  0x68   : > { %1960 = vmatpush.xpose.msk.msra.mxu2 %vm543_vm0, %v484_v61  ;;  %v438_v61 = vmul.f32 2.0, %v414_v59  ;;  %v1059_v59 = vunpack.c.2.s8 %v2693_v39 }
  0x69   : > { %1936 = vmatpush.xpose.msk.msra.mxu1 %vm543_vm0, %v468_v62 }
  0x6b   : > { %1913 = vmatpush.xpose.msk.msra.mxu0 %vm543_vm0, %v451_v63 }
  0x6c   : > { %1961 = vmatpush.xpose.msk.msra.mxu2 %vm543_vm0, %v483_v0 }
  0x6d   : > { %1937 = vmatpush.xpose.msk.msra.mxu1 %vm543_vm0, %v467_v1 }
  0x6f   : > { %1914 = vmatpush.xpose.msk.msra.mxu0 %vm543_vm0, %v450_v2 }
  0x70   : > { %1962 = vmatpush.xpose.msk.msra.mxu2 %vm543_vm0, %v482_v3 }
  0x71   : > { %1938 = vmatpush.xpose.msk.msra.mxu1 %vm543_vm0, %v466_v4 }
  0x73   : > { %1915 = vmatpush.xpose.msk.msra.mxu0 %vm543_vm0, %v449_v5 }
  0x74   : > { %1963 = vmatpush.xpose.msk.msra.mxu2 %vm543_vm0, %v481_v6 }
  0x75   : > { %1939 = vmatpush.xpose.msk.msra.mxu1 %vm543_vm0, %v465_v7 }
  0x77   : > { %1916 = vmatpush.xpose.msk.msra.mxu0 %vm543_vm0, %v448_v8 }
  0x78   : > { %1964 = vmatpush.xpose.msk.msra.mxu2 %vm543_vm0, %v480_v9 }
  0x79   : > { %1940 = vmatpush.xpose.msk.msra.mxu1 %vm543_vm0, %v464_v11 }
  0x7b   : > { %1917 = vmatpush.xpose.msk.msra.mxu0 %vm543_vm0, %v447_v12 }
  0x7c   : > { %1965 = vmatpush.xpose.msk.msra.mxu2 %vm543_vm0, %v479_v14 }
  0x7d   : > { %1941 = vmatpush.xpose.msk.msra.mxu1 %vm543_vm0, %v463_v18 }
  0x7e   : > { %1918 = vmatmul.msk.f32.vlgmr.msra.gmra.mxu0 %vm543_vm0, %v423_v15 }
  0x7f   : > { %1966 = vmatmul.msk.f32.vlgmr.msra.gmra.mxu2 %vm543_vm0, %v439_v17  ;;  %v510_v17 = vld [vmem:[%s3323_s2 + $0x78] sm:$0xff] }
  0x80   : > { %1942 = vmatmul.msk.f32.vlgmr.msra.gmra.mxu1 %vm543_vm0, %v431_v19  ;;  %1153 = vmatpush.msra.mxu3 %v510_v17  ;;  %v509_v19 = vld [vmem:[%s3323_s2 + $0x70] sm:$0xff]  ;;  %v538_v17 = vld [vmem:[%s3323_s2 + $0x158] sm:$0xff] }
  0x82   : > { %1154 = vmatpush.msra.mxu3 %v509_v19  ;;  %v521_v19 = vld [vmem:[%s3323_s2 + $0xd0] sm:$0xff] }
  0x84   : > { %1155 = vmatpush.msra.mxu3 %v508_v20  ;;  %v520_v20 = vld [vmem:[%s3323_s2 + $0xc8] sm:$0xff] }
  0x86   : > { %1919 = vmatmul.msk.f32.gmra.mxu0 %vm543_vm0, %v424_v22  ;;  %v507_v22 = vld [vmem:[%s3323_s2 + $0x60] sm:$0xff] }
  0x87   : > { %1967 = vmatmul.msk.f32.gmra.mxu2 %vm543_vm0, %v440_v24  ;;  %1156 = vmatpush.msra.mxu3 %v507_v22  ;;  %v506_v24 = vld [vmem:[%s3323_s2 + $0x58] sm:$0xff]  ;;  %v537_v22 = vld [vmem:[%s3323_s2 + $0x150] sm:$0xff] }
  0x88   : > { %1943 = vmatmul.msk.f32.gmra.mxu1 %vm543_vm0, %v432_v25  ;;  %v505_v25 = vld [vmem:[%s3323_s2 + $0x50] sm:$0xff] }
  0x89   : > { %1157 = vmatpush.msra.mxu3 %v506_v24 }
  0x8b   : > { %1158 = vmatpush.msra.mxu3 %v505_v25 }
  0x8d   : > { %1159 = vmatpush.msra.mxu3 %v504_v26  ;;  %v1060_v26 = vunpack.c.3.s8 %v2693_v39 }
  0x8e   : > { %1920 = vmatmul.msk.f32.gmra.mxu0 %vm543_vm0, %v425_v28 }
  0x8f   : > { %1968 = vmatmul.msk.f32.gmra.mxu2 %vm543_vm0, %v441_v30  ;;  %1160 = vmatpush.msra.mxu3 %v503_v27  ;;  %v501_v30 = vld [vmem:[%s3323_s2 + $0x30] sm:$0xff]  ;;  %v536_v27 = vld [vmem:[%s3323_s2 + $0x148] sm:$0xff] }
  0x90   : > { %1944 = vmatmul.msk.f32.gmra.mxu1 %vm543_vm0, %v433_v31  ;;  %v500_v31 = vld [vmem:[%s3323_s2 + $0x28] sm:$0xff] }
  0x91   : > { %1161 = vmatpush.msra.mxu3 %v502_v29 }
  0x93   : > { %1162 = vmatpush.msra.mxu3 %v501_v30 }
  0x95   : > { %1163 = vmatpush.msra.mxu3 %v500_v31  ;;  %v535_v31 = vld [vmem:[%s3323_s2 + $0x140] sm:$0xff] }
  0x96   : > { %1921 = vmatmul.msk.f32.gmra.mxu0 %vm543_vm0, %v426_v34  ;;  %v498_v34 = vld [vmem:[%s3323_s2 + $0x18] sm:$0xff] }
  0x97   : > { %1969 = vmatmul.msk.f32.gmra.mxu2 %vm543_vm0, %v442_v36  ;;  %1164 = vmatpush.msra.mxu3 %v499_v33  ;;  %v496_v36 = vld [vmem:[%s3323_s2 + $0x8] sm:$0xff]  ;;  %v1084_v33 = vand.u32 255, %v1060_v26 }
  0x98   : > { %1945 = vmatmul.msk.f32.gmra.mxu1 %vm543_vm0, %v434_v37  ;;  %v495_v37 = vld [vmem:[%s3323_s2] sm:$0xff] }
  0x99   : > { %1165 = vmatpush.msra.mxu3 %v498_v34  ;;  %v2755_v34 = vld [vmem:[%s2690_s27 + $0x8] sm:$0xff]  ;;  %vm1108_vm4 = vcmp.ge.s32.totalorder %v1084_v33, 64 }
  0x9a   : > { %v1064_v33 = vunpack.c.3.s8 %v2755_v34 }
  0x9b   : > { %1166 = vmatpush.msra.mxu3 %v497_v35  ;;  %v518_v35 = vld [vmem:[%s3323_s2 + $0xb8] sm:$0xff] }
  0x9d   : > { %1167 = vmatpush.msra.mxu3 %v496_v36  ;;  %v534_v36 = vld [vmem:[%s3323_s2 + $0x138] sm:$0xff] }
  0x9e   : > { %1922 = vmatmul.msk.f32.gmra.mxu0 %vm543_vm0, %v427_v40 }
  0x9f   : > { %1970 = vmatmul.msk.f32.gmra.mxu2 %vm543_vm0, %v443_v42  ;;  %1168 = vmatpush.msra.mxu3 %v495_v37  ;;  %v1057_v42 = vunpack.c.0.s8 %v2693_v39  ;;  %v517_v37 = vld [vmem:[%s3323_s2 + $0xb0] sm:$0xff] }
  0xa0   : > { %1946 = vmatmul.msk.f32.gmra.mxu1 %vm543_vm0, %v435_v43 }
  0xa1   : > { %1194 = vmatpush.msrb.mxu3 %v526_v38  ;;  %v1081_v44 = vand.u32 255, %v1057_v42  ;;  %v533_v38 = vld [vmem:[%s3323_s2 + $0x130] sm:$0xff]  ;;  %v516_v42 = vld [vmem:[%s3323_s2 + $0xa8] sm:$0xff] }
  0xa3   : > { %1195 = vmatpush.msrb.mxu3 %v525_v45  ;;  %vm1105_vm1 = vcmp.ge.s32.totalorder %v1081_v44, 64 }
  0xa6   : > { %1923 = vmatmul.msk.f32.gmra.mxu0 %vm543_vm0, %v428_v46  ;;  %v524_v46 = vld [vmem:[%s3323_s2 + $0xe8] sm:$0xff] }
  0xa7   : > { %1971 = vmatmul.msk.f32.gmra.mxu2 %vm543_vm0, %v444_v48  ;;  %1196 = vmatpush.msrb.mxu3 %v524_v46  ;;  %v531_v46 = vld [vmem:[%s3323_s2 + $0x120] sm:$0xff] }
  0xa8   : > { %1947 = vmatmul.msk.f32.gmra.mxu1 %vm543_vm0, %v436_v49  ;;  %v1058_v49 = vunpack.c.1.s8 %v2693_v39 }
  0xa9   : > { %1197 = vmatpush.msrb.mxu3 %v523_v53 }
  0xae   : > { %1924 = vmatmul.msk.f32.gmra.mxu0 %vm543_vm0, %v429_v52  ;;  %v1082_v52 = vand.u32 255, %v1058_v49  ;;  %v530_v49 = vld [vmem:[%s3323_s2 + $0x118] sm:$0xff] }
  0xaf   : > { %1972 = vmatmul.msk.f32.gmra.mxu2 %vm543_vm0, %v445_v54  ;;  %v542_v54 = vld [vmem:[%s3323_s2 + $0x178] sm:$0xff] }
  0xb0   : > { %1948 = vmatmul.msk.f32.gmra.mxu1 %vm543_vm0, %v437_v55  ;;  %v522_v55 = vld [vmem:[%s3323_s2 + $0xd8] sm:$0xff]  ;;  %1235 = vmatpush.msrb.mxu0 %v542_v54  ;;  %vm1106_vm2 = vcmp.ge.s32.totalorder %v1082_v52, 64 }
  0xb1   : > { %2005 = vmatpush.msrb.mxu1 %v542_v54  ;;  %2006 = vmatpush.msrb.mxu2 %v542_v54  ;;  %v1062_v54 = vunpack.c.1.s8 %v2755_v34 }
  0xb2   : > { %1198 = vmatpush.msrb.mxu3 %v522_v55  ;;  %1236 = vmatpush.msrb.mxu0 %v541_v56  ;;  %v512_v55 = vld [vmem:[%s3323_s2 + $0x88] sm:$0xff] }
  0xb3   : > { %2007 = vmatpush.msrb.mxu1 %v541_v56  ;;  %2008 = vmatpush.msrb.mxu2 %v541_v56  ;;  %v528_v56 = vld [vmem:[%s3323_s2 + $0x108] sm:$0xff] }
  0xb4   : > { %1199 = vmatpush.msrb.mxu3 %v521_v19  ;;  %v1063_v19 = vunpack.c.2.s8 %v2755_v34 }
  0xb6   : > { %1925 = vmatmul.msk.f32.gmra.mxu0 %vm543_vm0, %v430_v58  ;;  %1200 = vmatpush.msrb.mxu3 %v520_v20 }
  0xb7   : > { %1973 = vmatmul.msk.f32.gmra.mxu2 %vm543_vm0, %v446_v60  ;;  %v540_v60 = vld [vmem:[%s3323_s2 + $0x168] sm:$0xff] }
  0xb8   : > { %1949 = vmatmul.msk.f32.gmra.mxu1 %vm543_vm0, %v438_v61  ;;  %1237 = vmatpush.msrb.mxu0 %v540_v60 }
  0xb9   : > { %2009 = vmatpush.msrb.mxu1 %v540_v60  ;;  %2010 = vmatpush.msrb.mxu2 %v540_v60  ;;  %v1086_v60 = vand.u32 255, %v1062_v54 }
  0xbb   : > { %vm1110_vm6 = vcmp.ge.s32.totalorder %v1086_v60, 64 }
  0xfb   : > { %v2565_v62 = vpop.f32.mrf.mxu0 }
  0xfc   : > { %883 = vmax.xlane.f32.xlu0 %v2565_v62 }
  0xfd   : > { %v2570_v0 = vpop.f32.mrf.mxu1 }
 0x102   : > { %v2573_v1 = vpop.f32.mrf.mxu2 }
 0x103   : > { %v2568_v63 = vpop.f32.mrf.mxu0 }
 0x104   : > { %885 = vmax.xlane.f32.xlu0 %v2568_v63 }
 0x105   : > { %v2578_v3 = vpop.f32.mrf.mxu1 }
 0x10a   : > { %v2580_v4 = vpop.f32.mrf.mxu2 }
 0x10b   : > { %v2575_v2 = vpop.f32.mrf.mxu0 }
 0x10c   : > { %887 = vmax.xlane.f32.xlu1 %v2575_v2 }
 0x10d   : > { %v2585_v6 = vpop.f32.mrf.mxu1 }
 0x112   : > { %v2587_v7 = vpop.f32.mrf.mxu2 }
 0x113   : > { %v2582_v5 = vpop.f32.mrf.mxu0 }
 0x114   : > { %889 = vmax.xlane.f32.xlu1 %v2582_v5 }
 0x115   : > { %v2592_v9 = vpop.f32.mrf.mxu1 }
 0x11a   : > { %v2596_v11 = vpop.f32.mrf.mxu2 }
 0x11b   : > { %v2589_v8 = vpop.f32.mrf.mxu0 }
 0x11c   : > { %891 = vmax.xlane.f32.xlu2 %v2589_v8 }
 0x11d   : > { %v2601_v13 = vpop.f32.mrf.mxu1 }
 0x122   : > { %v2605_v14 = vpop.f32.mrf.mxu2 }
 0x123   : > { %v2594_v10 = vpop.f32.mrf.mxu0 }
 0x124   : > { %893 = vmax.xlane.f32.xlu2 %v2594_v10 }
 0x125   : > { %v2612_v16 = vpop.f32.mrf.mxu1 }
 0x12a   : > { %v2617_v18 = vpop.f32.mrf.mxu2 }
 0x12b   : > { %v2599_v12 = vpop.f32.mrf.mxu0 }
 0x12c   : > { %899 = vmax.xlane.f32.xlu2 %v2570_v0  ;;  %895 = vmax.xlane.f32.xlu0 %v2599_v12 }
 0x12d   : > { %v2628_v21 = vpop.f32.mrf.mxu1 }
 0x132   : > { %v2633_v23 = vpop.f32.mrf.mxu2 }
 0x133   : > { %v2607_v15 = vpop.f32.mrf.mxu0 }
 0x134   : > { %905 = vmax.xlane.f32.xlu2 %v2592_v9  ;;  %901 = vmax.xlane.f32.xlu0 %v2578_v3 }
 0x135   : > { %897 = vmax.xlane.f32.xlu1 %v2607_v15  ;;  %v2650_v28 = vpop.f32.mrf.mxu1 }
 0x13a   : > { %v2664_v32 = vpop.f32.mrf.mxu2 }
 0x13c   : > { %915 = vmax.xlane.f32.xlu2 %v2573_v1  ;;  %907 = vmax.xlane.f32.xlu0 %v2601_v13 }
 0x13d   : > { %903 = vmax.xlane.f32.xlu1 %v2585_v6 }
 0x144   : > { %927 = vmax.xlane.f32.xlu2 %v2633_v23  ;;  %921 = vmax.xlane.f32.xlu0 %v2596_v11 }
 0x145   : > { %909 = vmax.xlane.f32.xlu1 %v2612_v16 }
 0x14c   : > { %913 = vmax.xlane.f32.xlu2 %v2650_v28  ;;  %917 = vmax.xlane.f32.xlu0 %v2580_v4 }
 0x14d   : > { %911 = vmax.xlane.f32.xlu1 %v2628_v21 }
 0x154   : > { %925 = vmax.xlane.f32.xlu2 %v2617_v18  ;;  %929 = vmax.xlane.f32.xlu0 %v2664_v32 }
 0x155   : > { %923 = vmax.xlane.f32.xlu1 %v2605_v14 }
 0x15d   : > { %919 = vmax.xlane.f32.xlu1 %v2587_v7 }
 0x16f   : > { %v884_v40 = vpop.xlane.xlu0 %883 }
 0x170   : > { %v931_v41 = vsub.f32 %v2565_v62, %v884_v40 }
 0x172   : > { %v955_v43 = vmul.f32 1.442695, %v931_v41  ;;  %v1061_v41 = vunpack.c.0.s8 %v2755_v34 }
 0x174   : > { %2065 = vpow2.f32 %v955_v43  ;;  %v532_v43 = vld [vmem:[%s3323_s2 + $0x128] sm:$0xff] }
 0x177   : > { %v886_v47 = vpop.xlane.xlu0 %885 }
 0x178   : > { %v932_v48 = vsub.f32 %v2568_v63, %v886_v47  ;;  %v539_v63 = vld [vmem:[%s3323_s2 + $0x160] sm:$0xff]  ;;  %v1085_v47 = vand.u32 255, %v1061_v41 }
 0x179   : > { %1238 = vmatpush.msrb.mxu0 %v539_v63  ;;  %2011 = vmatpush.msrb.mxu1 %v539_v63 }
 0x17a   : > { %v2066_v50 = vpop.eup %2065  ;;  %v957_v51 = vmul.f32 1.442695, %v932_v48  ;;  %2012 = vmatpush.msrb.mxu2 %v539_v63  ;;  %v514_v48 = vld [vmem:[%s3323_s2 + $0x98] sm:$0xff]  ;;  %vm1109_vm5 = vcmp.ge.s32.totalorder %v1085_v47, 64 }
 0x17b   : > { %1974 = vmatmul.msk.f32.vlgmr.msra.gmra.mxu3 %vm1105_vm1, %v2066_v50  ;;  %1003 = vadd.xlane.f32.xlu0 %v2066_v50  ;;  %v513_v50 = vld [vmem:[%s3323_s2 + $0x90] sm:$0xff]  ;;  %v2844_v47 = vld [vmem:[%s2690_s27 + $0x28] sm:$0xff] }
 0x17c   : > { %2067 = vpow2.f32 %v957_v51  ;;  %1239 = vmatpush.msrb.mxu0 %v538_v17  ;;  %2013 = vmatpush.msrb.mxu1 %v538_v17  ;;  %v529_v51 = vld [vmem:[%s3323_s2 + $0x110] sm:$0xff] }
 0x17d   : > { %2014 = vmatpush.msrb.mxu2 %v538_v17 }
 0x17e   : > { %1240 = vmatpush.msrb.mxu0 %v537_v22  ;;  %2015 = vmatpush.msrb.mxu1 %v537_v22 }
 0x17f   : > { %v888_v57 = vpop.xlane.xlu1 %887  ;;  %2016 = vmatpush.msrb.mxu2 %v537_v22 }
 0x180   : > { %v933_v58 = vsub.f32 %v2575_v2, %v888_v57  ;;  %v1083_v2 = vand.u32 255, %v1059_v59  ;;  %1241 = vmatpush.msrb.mxu0 %v536_v27  ;;  %2017 = vmatpush.msrb.mxu1 %v536_v27  ;;  %v527_v59 = vld [vmem:[%s3323_s2 + $0x100] sm:$0xff] }
 0x181   : > { %2018 = vmatpush.msrb.mxu2 %v536_v27 }
 0x182   : > { %v2722_v61 = vpop.eup %2067  ;;  %v959_v62 = vmul.f32 1.442695, %v933_v58  ;;  %vm1107_vm3 = vcmp.ge.s32.totalorder %v1083_v2, 64  ;;  %1242 = vmatpush.msrb.mxu0 %v535_v31  ;;  %2019 = vmatpush.msrb.mxu1 %v535_v31 }
 0x183   : > { %1975 = vmatmul.msk.f32.gmra.mxu3 %vm1106_vm2, %v2722_v61  ;;  %2020 = vmatpush.msrb.mxu2 %v535_v31 }
 0x184   : > { %2069 = vpow2.f32 %v959_v62  ;;  %1243 = vmatpush.msrb.mxu0 %v534_v36  ;;  %2021 = vmatpush.msrb.mxu1 %v534_v36 }
 0x185   : > { %2022 = vmatpush.msrb.mxu2 %v534_v36 }
 0x186   : > { %1244 = vmatpush.msrb.mxu0 %v533_v38  ;;  %2023 = vmatpush.msrb.mxu1 %v533_v38 }
 0x187   : > { %v890_v24 = vpop.xlane.xlu1 %889  ;;  %2024 = vmatpush.msrb.mxu2 %v533_v38 }
 0x188   : > { %v934_v25 = vsub.f32 %v2582_v5, %v890_v24  ;;  %v519_v5 = vld [vmem:[%s3323_s2 + $0xc0] sm:$0xff]  ;;  %1245 = vmatpush.msrb.mxu0 %v532_v43  ;;  %2025 = vmatpush.msrb.mxu1 %v532_v43 }
 0x189   : > { %1201 = vmatpush.msrb.mxu3 %v519_v5  ;;  %2026 = vmatpush.msrb.mxu2 %v532_v43 }
 0x18a   : > { %v2745_v29 = vpop.eup %2069  ;;  %v961_v30 = vmul.f32 1.442695, %v934_v25  ;;  %1246 = vmatpush.msrb.mxu0 %v531_v46  ;;  %2027 = vmatpush.msrb.mxu1 %v531_v46  ;;  %v1087_v25 = vand.u32 255, %v1063_v19 }
 0x18b   : > { %1976 = vmatmul.msk.f32.gmra.mxu3 %vm1107_vm3, %v2745_v29  ;;  %2028 = vmatpush.msrb.mxu2 %v531_v46 }
 0x18c   : > { %2071 = vpow2.f32 %v961_v30  ;;  %1202 = vmatpush.msrb.mxu3 %v518_v35  ;;  %1247 = vmatpush.msrb.mxu0 %v530_v49  ;;  %vm1111_vm7 = vcmp.ge.s32.totalorder %v1087_v25, 64 }
 0x18d   : > { %2029 = vmatpush.msrb.mxu1 %v530_v49  ;;  %2030 = vmatpush.msrb.mxu2 %v530_v49 }
 0x18e   : > { %1203 = vmatpush.msrb.mxu3 %v517_v37  ;;  %1248 = vmatpush.msrb.mxu0 %v529_v51  ;;  %v2830_v37 = vld [vmem:[%s2690_s27 + $0x20] sm:$0xff] }
 0x18f   : > { %v892_v39 = vpop.xlane.xlu2 %891  ;;  %2031 = vmatpush.msrb.mxu1 %v529_v51  ;;  %2032 = vmatpush.msrb.mxu2 %v529_v51  ;;  %v1073_v41 = vunpack.c.0.s8 %v2830_v37  ;;  %v1076_v54 = vunpack.c.3.s8 %v2830_v37 }
 0x190   : > { %v935_v40 = vsub.f32 %v2589_v8, %v892_v39  ;;  %1204 = vmatpush.msrb.mxu3 %v516_v42  ;;  %v515_v8 = vld [vmem:[%s3323_s2 + $0xa0] sm:$0xff]  ;;  %1249 = vmatpush.msrb.mxu0 %v528_v56 }
 0x191   : > { %2033 = vmatpush.msrb.mxu1 %v528_v56  ;;  %2034 = vmatpush.msrb.mxu2 %v528_v56  ;;  %v1097_v46 = vand.u32 255, %v1073_v41 }
 0x192   : > { %v2777_v44 = vpop.eup %2071  ;;  %v963_v45 = vmul.f32 1.442695, %v935_v40  ;;  %1205 = vmatpush.msrb.mxu3 %v515_v8  ;;  %1250 = vmatpush.msrb.mxu0 %v527_v59 }
 0x193   : > { %1977 = vmatmul.msk.f32.gmra.mxu3 %vm1108_vm4, %v2777_v44  ;;  %2035 = vmatpush.msrb.mxu1 %v527_v59  ;;  %vm1121_vm9 = vcmp.ge.s32.totalorder %v1097_v46, 64 }
 0x194   : > { %2073 = vpow2.f32 %v963_v45  ;;  %1206 = vmatpush.msrb.mxu3 %v514_v48  ;;  %2036 = vmatpush.msrb.mxu2 %v527_v59 }
 0x196   : > { %1207 = vmatpush.msrb.mxu3 %v513_v50 }
 0x197   : > { %v894_v52 = vpop.xlane.xlu2 %893 }
 0x198   : > { %v936_v53 = vsub.f32 %v2594_v10, %v894_v52  ;;  %1208 = vmatpush.msrb.mxu3 %v512_v55  ;;  %v511_v10 = vld [vmem:[%s3323_s2 + $0x80] sm:$0xff] }
 0x19a   : > { %v2806_v57 = vpop.eup %2073  ;;  %v965_v58 = vmul.f32 1.442695, %v936_v53  ;;  %1209 = vmatpush.msrb.mxu3 %v511_v10  ;;  %v1079_v53 = vunpack.c.2.s8 %v2844_v47 }
 0x19b   : > { %1978 = vmatmul.msk.f32.gmra.mxu3 %vm1109_vm5, %v2806_v57 }
 0x19c   : > { %2075 = vpow2.f32 %v965_v58 }
 0x19f   : > { %v900_v62 = vpop.xlane.xlu2 %899  ;;  %v896_v63 = vpop.xlane.xlu0 %895 }
 0x1a0   : > { %v939_v2 = vsub.f32 %v2570_v0, %v900_v62  ;;  %v937_v17 = vsub.f32 %v2599_v12, %v896_v63 }
 0x1a2   : > { %v2818_v20 = vpop.eup %2075  ;;  %v971_v22 = vmul.f32 1.442695, %v939_v2  ;;  %v967_v24 = vmul.f32 1.442695, %v937_v17 }
 0x1a3   : > { %1979 = vmatmul.msk.f32.gmra.mxu3 %vm1110_vm6, %v2818_v20 }
 0x1a4   : > { %2077 = vpow2.f32 %v971_v22  ;;  %v1074_v22 = vunpack.c.1.s8 %v2830_v37 }
 0x1a5   : > { %2079 = vpow2.f32 %v967_v24 }
 0x1a7   : > { %v2821_v26 = vpop.xlane.xlu2 %905  ;;  %v902_v27 = vpop.xlane.xlu0 %901 }
 0x1a8   : > { %v940_v0 = vsub.f32 %v2578_v3, %v902_v27  ;;  %v898_v30 = vpop.xlane.xlu1 %897  ;;  %v1088_v3 = vand.u32 255, %v1064_v33 }
 0x1a9   : > { %v938_v12 = vsub.f32 %v2607_v15, %v898_v30  ;;  %v2835_v15 = vld [vmem:[%s2690_s27 + $0x10] sm:$0xff] }
 0x1aa   : > { %v2078_v5 = vpop.eup %2077  ;;  %v973_v31 = vmul.f32 1.442695, %v940_v0  ;;  %vm1112_vm8 = vcmp.ge.s32.totalorder %v1088_v3, 64  ;;  %v1065_v43 = vunpack.c.0.s8 %v2835_v15  ;;  %v1066_v10 = vunpack.c.1.s8 %v2835_v15 }
 0x1ab   : > { %v2826_v35 = vpop.eup %2079  ;;  %v969_v36 = vmul.f32 1.442695, %v938_v12  ;;  %1019 = vadd.xlane.f32.xlu2 %v2078_v5  ;;  %v1067_v25 = vunpack.c.2.s8 %v2835_v15  ;;  %v1098_v0 = vand.u32 255, %v1074_v22  ;;  %v1080_v3 = vunpack.c.3.s8 %v2844_v47 }
 0x1ac   : > { %1980 = vmatmul.msk.f32.gmra.mxu3 %vm1111_vm7, %v2826_v35  ;;  %2081 = vpow2.f32 %v973_v31  ;;  %v1089_v48 = vand.u32 255, %v1065_v43  ;;  %v1090_v60 = vand.u32 255, %v1066_v10 }
 0x1ad   : > { %2083 = vpow2.f32 %v969_v36  ;;  %v1091_v30 = vand.u32 255, %v1067_v25  ;;  %vm1122_vm14 = vcmp.ge.s32.totalorder %v1098_v0, 64 }
 0x1ae   : > { %vm1113_vm10 = vcmp.ge.s32.totalorder %v1089_v48, 64  ;;  %vm1114_vm13 = vcmp.ge.s32.totalorder %v1090_v60, 64 }
 0x1af   : > { %v916_v38 = vpop.xlane.xlu2 %915  ;;  %v2832_v39 = vpop.xlane.xlu0 %907  ;;  %vm1115_vm15 = vcmp.ge.s32.totalorder %v1091_v30, 64 }
 0x1b0   : > { %v947_v40 = vsub.f32 %v2573_v1, %v916_v38  ;;  %v904_v34 = vpop.xlane.xlu1 %903 }
 0x1b1   : > { %v941_v59 = vsub.f32 %v2585_v6, %v904_v34 }
 0x1b2   : > { %v987_v42 = vmul.f32 1.442695, %v947_v40  ;;  %v2082_v45 = vpop.eup %2081 }
 0x1b3   : > { %v2840_v8 = vpop.eup %2083  ;;  %1021 = vadd.xlane.f32.xlu0 %v2082_v45  ;;  %v975_v63 = vmul.f32 1.442695, %v941_v59 }
 0x1b4   : > { %2085 = vpow2.f32 %v987_v42  ;;  %1981 = vmatmul.msk.f32.gmra.mxu3 %vm1112_vm8, %v2840_v8 }
 0x1b7   : > { %v928_v49 = vpop.xlane.xlu2 %927  ;;  %v922_v1 = vpop.xlane.xlu0 %921 }
 0x1b8   : > { %v953_v50 = vsub.f32 %v2633_v23, %v928_v49  ;;  %v950_v51 = vsub.f32 %v2596_v11, %v922_v1  ;;  %v2848_v52 = vpop.xlane.xlu1 %909  ;;  %v1103_v23 = vand.u32 255, %v1079_v53  ;;  %v1100_v11 = vand.u32 255, %v1076_v54 }
 0x1b9   : > { %v1075_v53 = vunpack.c.2.s8 %v2830_v37 }
 0x1ba   : > { %v2086_v55 = vpop.eup %2085  ;;  %v999_v56 = vmul.f32 1.442695, %v953_v50  ;;  %v993_v58 = vmul.f32 1.442695, %v950_v51  ;;  %vm1127_vm11 = vcmp.ge.s32.totalorder %v1103_v23, 64  ;;  %vm1124_vm12 = vcmp.ge.s32.totalorder %v1100_v11, 64 }
 0x1bb   : > { %1990 = vmatmul.msk.f32.vlgmr.msrb.gmra.mxu0 %vm1121_vm9, %v2086_v55  ;;  %1035 = vadd.xlane.f32.xlu1 %v2086_v55  ;;  %v1078_v50 = vunpack.c.1.s8 %v2844_v47 }
 0x1bc   : > { %2087 = vpow2.f32 %v999_v56  ;;  %1982 = vmatmul.msk.f32.vlgmr.msrb.gmra.mxu3 %vm1113_vm10, %v2078_v5  ;;  %v1099_v56 = vand.u32 255, %v1075_v53 }
 0x1bd   : > { %2089 = vpow2.f32 %v993_v58  ;;  %v1102_v55 = vand.u32 255, %v1078_v50 }
 0x1be   : > { %2091 = vpow2.f32 %v975_v63  ;;  %vm1123_vm6 = vcmp.ge.s32.totalorder %v1099_v56, 64 }
 0x1bf   : > { %v918_v62 = vpop.xlane.xlu0 %917  ;;  %v2857_v19 = vpop.xlane.xlu2 %913  ;;  %vm1126_vm5 = vcmp.ge.s32.totalorder %v1102_v55, 64 }
 0x1c0   : > { %v948_v2 = vsub.f32 %v2580_v4, %v918_v62  ;;  %v2855_v17 = vpop.xlane.xlu1 %911  ;;  %v942_v4 = vsub.f32 %v2592_v9, %v2821_v26  ;;  %v1077_v26 = vunpack.c.0.s8 %v2844_v47 }
 0x1c2   : > { %v2860_v24 = vpop.eup %2087  ;;  %v989_v6 = vmul.f32 1.442695, %v948_v2  ;;  %v977_v5 = vmul.f32 1.442695, %v942_v4  ;;  %v1101_v43 = vand.u32 255, %v1077_v26 }
 0x1c3   : > { %v2090_v27 = vpop.eup %2089  ;;  %1996 = vmatmul.msk.f32.vlgmr.msrb.gmra.mxu2 %vm1127_vm11, %v2860_v24  ;;  %1005 = vadd.xlane.f32.xlu1 %v2722_v61  ;;  %v1068_v61 = vunpack.c.3.s8 %v2835_v15 }
 0x1c4   : > { %1993 = vmatmul.msk.f32.vlgmr.msrb.gmra.mxu1 %vm1124_vm12, %v2090_v27  ;;  %2093 = vpow2.f32 %v989_v6  ;;  %1983 = vmatmul.msk.f32.gmra.mxu3 %vm1114_vm13, %v2082_v45  ;;  %v2092_v38 = vpop.eup %2091  ;;  %v2876_v45 = vld [vmem:[%s2690_s27 + $0x18] sm:$0xff]  ;;  %vm1125_vm3 = vcmp.ge.s32.totalorder %v1101_v43, 64  ;;  %s2904_s27 = scalar_lea.vmem [#allocation4], %s2477_s25  ;;  %s2004_s25 = sshll.u32 (%p2244_p5), %s1893_s18, 6 }
 0x1c5   : > { %2095 = vpow2.f32 %v977_v5  ;;  %v1092_v15 = vand.u32 255, %v1068_v61  ;;  %v1070_v37 = vunpack.c.1.s8 %v2876_v45  ;;  %v1071_v60 = vunpack.c.2.s8 %v2876_v45  ;;  %s3263_s24 = scalar_lea.vmem (%p2244_p5), %s3325_s4, %s2004_s25 }
 0x1c7   : > { %v930_v12 = vpop.xlane.xlu0 %929  ;;  %v926_v34 = vpop.xlane.xlu2 %925  ;;  %vm1116_vm2 = vcmp.ge.s32.totalorder %v1092_v15, 64  ;;  %v1095_v62 = vand.u32 255, %v1071_v60 }
 0x1c8   : > { %v954_v31 = vsub.f32 %v2664_v32, %v930_v12  ;;  %v924_v33 = vpop.xlane.xlu1 %923  ;;  %v943_v32 = vsub.f32 %v2601_v13, %v2832_v39  ;;  %v952_v42 = vsub.f32 %v2617_v18, %v926_v34  ;;  %v1069_v39 = vunpack.c.0.s8 %v2876_v45 }
 0x1c9   : > { %v951_v36 = vsub.f32 %v2605_v14, %v924_v33  ;;  %v1104_v14 = vand.u32 255, %v1080_v3  ;;  %vm1119_vm8 = vcmp.ge.s32.totalorder %v1095_v62, 64 }
 0x1ca   : > { %v1001_v9 = vmul.f32 1.442695, %v954_v31  ;;  %v2094_v40 = vpop.eup %2093  ;;  %v979_v46 = vmul.f32 1.442695, %v943_v32  ;;  %v997_v13 = vmul.f32 1.442695, %v952_v42 }
 0x1cb   : > { %v995_v41 = vmul.f32 1.442695, %v951_v36  ;;  %1023 = vadd.xlane.f32.xlu1 %v2092_v38  ;;  %1037 = vadd.xlane.f32.xlu2 %v2094_v40  ;;  %vm1128_vm1 = vcmp.ge.s32.totalorder %v1104_v14, 64  ;;  %v2096_v1 = vpop.eup %2095  ;;  %v1093_v47 = vand.u32 255, %v1069_v39 }
 0x1cc   : > { %1991 = vmatmul.msk.f32.gmra.mxu0 %vm1122_vm14, %v2094_v40  ;;  %2097 = vpow2.f32 %v1001_v9  ;;  %1984 = vmatmul.msk.f32.gmra.mxu3 %vm1115_vm15, %v2092_v38 }
 0x1cd   : > { %2099 = vpow2.f32 %v995_v41  ;;  %vm1117_vm4 = vcmp.ge.s32.totalorder %v1093_v47, 64 }
 0x1ce   : > { %2101 = vpow2.f32 %v979_v46 }
 0x1d0   : > { %v920_v48 = vpop.xlane.xlu1 %919 }
 0x1d1   : > { %v949_v49 = vsub.f32 %v2587_v7, %v920_v48  ;;  %v944_v7 = vsub.f32 %v2612_v16, %v2848_v52  ;;  %v1094_v52 = vand.u32 255, %v1070_v37 }
 0x1d2   : > { %v2881_v51 = vpop.eup %2097 }
 0x1d3   : > { %v991_v18 = vmul.f32 1.442695, %v949_v49  ;;  %1041 = vadd.xlane.f32.xlu1 %v2090_v27  ;;  %v2100_v54 = vpop.eup %2099  ;;  %1007 = vadd.xlane.f32.xlu2 %v2745_v29  ;;  %v981_v58 = vmul.f32 1.442695, %v944_v7  ;;  %v945_v29 = vsub.f32 %v2628_v21, %v2855_v17  ;;  %vm1118_vm7 = vcmp.ge.s32.totalorder %v1094_v52, 64 }
 0x1d4   : > { %1997 = vmatmul.msk.f32.gmra.mxu2 %vm1128_vm1, %v2881_v51  ;;  %1985 = vmatmul.msk.f32.gmra.mxu3 %vm1116_vm2, %v2096_v1  ;;  %v2102_v10 = vpop.eup %2101  ;;  %v1072_v21 = vunpack.c.3.s8 %v2876_v45 }
 0x1d5   : > { %2103 = vpow2.f32 %v991_v18  ;;  %1994 = vmatmul.msk.f32.gmra.mxu1 %vm1125_vm3, %v2100_v54  ;;  %v983_v11 = vmul.f32 1.442695, %v945_v29 }
 0x1d6   : > { %2105 = vpow2.f32 %v997_v13 }
 0x1d7   : > { %2107 = vpow2.f32 %v981_v58 }
 0x1d8   : > { %2109 = vpow2.f32 %v983_v11 }
 0x1db   : > { %v2104_v59 = vpop.eup %2103  ;;  %1011 = vadd.xlane.f32.xlu1 %v2806_v57  ;;  %1025 = vadd.xlane.f32.xlu2 %v2096_v1  ;;  %v946_v57 = vsub.f32 %v2650_v28, %v2857_v19 }
 0x1dc   : > { %v2106_v16 = vpop.eup %2105  ;;  %1039 = vadd.xlane.f32.xlu0 %v2104_v59  ;;  %1986 = vmatmul.msk.f32.gmra.mxu3 %vm1117_vm4, %v2102_v10 }
 0x1dd   : > { %1995 = vmatmul.msk.f32.gmra.mxu1 %vm1126_vm5, %v2106_v16  ;;  %1992 = vmatmul.msk.f32.gmra.mxu0 %vm1123_vm6, %v2104_v59  ;;  %v2108_v23 = vpop.eup %2107  ;;  %v985_v63 = vmul.f32 1.442695, %v946_v57 }
 0x1de   : > { %v2110_v2 = vpop.eup %2109 }
 0x1df   : > { %2111 = vpow2.f32 %v985_v63 }
 0x1e3   : > { %1029 = vadd.xlane.f32.xlu1 %v2108_v23  ;;  %1043 = vadd.xlane.f32.xlu2 %v2100_v54 }
 0x1e4   : > { %1009 = vadd.xlane.f32.xlu0 %v2777_v44  ;;  %1987 = vmatmul.msk.f32.gmra.mxu3 %vm1118_vm7, %v2108_v23  ;;  %v1096_v44 = vand.u32 255, %v1072_v21 }
 0x1e5   : > { %v2112_v28 = vpop.eup %2111 }
 0x1e6   : > { %vm1120_vm9 = vcmp.ge.s32.totalorder %v1096_v44, 64 }
 0x1eb   : > { %1017 = vadd.xlane.f32.xlu1 %v2840_v8  ;;  %1013 = vadd.xlane.f32.xlu2 %v2818_v20 }
 0x1ec   : > { %1027 = vadd.xlane.f32.xlu0 %v2102_v10  ;;  %1988 = vmatmul.msk.f32.gmra.mxu3 %vm1119_vm8, %v2110_v2 }
 0x1ee   : > { %v1004_v17 = vpop.xlane.xlu0 %1003 }
 0x1ef   : > { %2113 = vrcp.f32 %v1004_v17  ;;  %v1287_v6 = vand.u32 2147483648, %v1004_v17  ;;  %v1285_v25 = vand.u32 2147483647, %v1004_v17  ;;  %vm1281_vm11 = vweird.f32 %v1004_v17 }
 0x1f1   : > { %vm1286_vm13 = vcmp.eq.f32.partialorder %v1285_v25, 8.507059e+37 }
 0x1f3   : > { %1047 = vadd.xlane.f32.xlu1 %v2860_v24  ;;  %1031 = vadd.xlane.f32.xlu2 %v2110_v2  ;;  %v1288_v24 = vor.u32 1.1754944e-38, %v1287_v6 }
 0x1f4   : > { %1015 = vadd.xlane.f32.xlu0 %v2826_v35  ;;  %1989 = vmatmul.msk.f32.gmra.mxu3 %vm1120_vm9, %v2112_v28 }
 0x1f5   : > { %v2114_v19 = vpop.eup %2113 }
 0x1f6   : > { %v1277_v22 = vmul.f32 %v2114_v19, %v1004_v17  ;;  %vm1282_vm10 = vweird.f32 %v2114_v19 }
 0x1f7   : > { %vm1283_vm12 = vmor %vm1281_vm11, %vm1282_vm10 }
 0x1f8   : > { %v1278_v8 = vsub.f32 1.0, %v1277_v22 }
 0x1fa   : > { %v1279_v20 = vmul.f32 %v2114_v19, %v1278_v8 }
 0x1fb   : > { %1049 = vadd.xlane.f32.xlu2 %v2881_v51 }
 0x1fc   : > { %1033 = vadd.xlane.f32.xlu0 %v2112_v28  ;;  %v1280_v27 = vadd.f32 %v2114_v19, %v1279_v20 }
 0x1fe   : > { %v1170_v4 = vpop.f32.mrf.mxu3  ;;  %v1284_v0 = vsel %vm1283_vm12, %v2114_v19, %v1280_v27 }
 0x1ff   : > { %v1289_v35 = vsel %vm1286_vm13, %v1288_v24, %v1284_v0 }
 0x200   : > { %v1290_v30 = vmul.f32 1.3333334, %v1289_v35 }
 0x202   : > { %v1636_v12 = vmul.f32 %v1290_v30, %v1170_v4 }
 0x204   : > { %1660 = vst.msk [vmem:[%s2904_s27] sm:$0xff] %vm543_vm0, %v1636_v12  ;;  %1045 = vadd.xlane.f32.xlu0 %v2106_v16 }
 0x206   : > { %v2908_v5 = vpop.f32.mrf.mxu3 }
 0x20e   : > { %v2910_v31 = vpop.f32.mrf.mxu3 }
 0x216   : > { %v2912_v33 = vpop.f32.mrf.mxu3 }
 0x21e   : > { %v2914_v36 = vpop.f32.mrf.mxu3  ;;  %v1020_v3 = vpop.xlane.xlu2 %1019 }
 0x21f   : > { %2115 = vrcp.f32 %v1020_v3  ;;  %v1407_v49 = vand.u32 2147483648, %v1020_v3  ;;  %vm1401_vm15 = vweird.f32 %v1020_v3  ;;  %v1405_v1 = vand.u32 2147483647, %v1020_v3 }
 0x221   : > { %v1408_v7 = vor.u32 1.1754944e-38, %v1407_v49  ;;  %vm1406_vm4 = vcmp.eq.f32.partialorder %v1405_v1, 8.507059e+37 }
 0x225   : > { %v2116_v61 = vpop.eup %2115 }
 0x226   : > { %v2916_v38 = vpop.f32.mrf.mxu3  ;;  %v1022_v9 = vpop.xlane.xlu0 %1021  ;;  %v1397_v26 = vmul.f32 %v2116_v61, %v1020_v3  ;;  %vm1402_vm14 = vweird.f32 %v2116_v61 }
 0x227   : > { %2117 = vrcp.f32 %v1022_v9  ;;  %vm1403_vm1 = vmor %vm1401_vm15, %vm1402_vm14  ;;  %v1420_v37 = vand.u32 2147483647, %v1022_v9  ;;  %v1422_v59 = vand.u32 2147483648, %v1022_v9  ;;  %vm1416_vm8 = vweird.f32 %v1022_v9 }
 0x228   : > { %v1398_v40 = vsub.f32 1.0, %v1397_v26 }
 0x229   : > { %vm1421_vm10 = vcmp.eq.f32.partialorder %v1420_v37, 8.507059e+37  ;;  %v1423_v19 = vor.u32 1.1754944e-38, %v1422_v59 }
 0x22a   : > { %v1399_v15 = vmul.f32 %v2116_v61, %v1398_v40 }
 0x22c   : > { %v1400_v45 = vadd.f32 %v2116_v61, %v1399_v15 }
 0x22d   : > { %v2918_v34 = vpop.eup %2117 }
 0x22e   : > { %v1036_v41 = vpop.xlane.xlu1 %1035  ;;  %v1412_v14 = vmul.f32 %v2918_v34, %v1022_v9  ;;  %v1404_v18 = vsel %vm1403_vm1, %v2116_v61, %v1400_v45  ;;  %vm1417_vm5 = vweird.f32 %v2918_v34 }
 0x22f   : > { %v2920_v32 = vpop.f32.mrf.mxu3  ;;  %2119 = vrcp.f32 %v1036_v41  ;;  %v1527_v51 = vand.u32 2147483648, %v1036_v41  ;;  %v1525_v54 = vand.u32 2147483647, %v1036_v41  ;;  %vm1521_vm3 = vweird.f32 %v1036_v41  ;;  %vm2935_vm9 = vmor %vm1416_vm8, %vm1417_vm5 }
 0x230   : > { %v1413_v42 = vsub.f32 1.0, %v1412_v14  ;;  %v1409_v55 = vsel %vm1406_vm4, %v1408_v7, %v1404_v18 }
 0x231   : > { %v1528_v10 = vor.u32 1.1754944e-38, %v1527_v51  ;;  %vm1526_vm7 = vcmp.eq.f32.partialorder %v1525_v54, 8.507059e+37  ;;  %v1410_v60 = vmul.f32 1.3333334, %v1409_v55 }
 0x232   : > { %v1414_v13 = vmul.f32 %v2918_v34, %v1413_v42 }
 0x234   : > { %v1415_v56 = vadd.f32 %v2918_v34, %v1414_v13 }
 0x235   : > { %v2120_v43 = vpop.eup %2119 }
 0x236   : > { %v1517_v46 = vmul.f32 %v2120_v43, %v1036_v41  ;;  %v1006_v48 = vpop.xlane.xlu1 %1005  ;;  %vm1522_vm2 = vweird.f32 %v2120_v43  ;;  %v1419_v2 = vsel %vm2935_vm9, %v2918_v34, %v1415_v56 }
 0x237   : > { %2121 = vrcp.f32 %v1006_v48  ;;  %v2924_v50 = vpop.f32.mrf.mxu3  ;;  %vm1523_vm6 = vmor %vm1521_vm3, %vm1522_vm2  ;;  %v1302_v17 = vand.u32 2147483648, %v1006_v48  ;;  %v1300_v8 = vand.u32 2147483647, %v1006_v48  ;;  %v1424_v20 = vsel %vm1421_vm10, %v1423_v19, %v1419_v2 }
 0x238   : > { %v1518_v39 = vsub.f32 1.0, %v1517_v46  ;;  %v1252_v44 = vpop.f32.mrf.mxu0  ;;  %vm1296_vm12 = vweird.f32 %v1006_v48  ;;  %v1425_v30 = vmul.f32 1.3333334, %v1424_v20 }
 0x239   : > { %v1303_v24 = vor.u32 1.1754944e-38, %v1302_v17  ;;  %vm1301_vm14 = vcmp.eq.f32.partialorder %v1300_v8, 8.507059e+37 }
 0x23a   : > { %v1519_v53 = vmul.f32 %v2120_v43, %v1518_v39 }
 0x23c   : > { %v1520_v47 = vadd.f32 %v2120_v43, %v1519_v53 }
 0x23d   : > { %v2122_v58 = vpop.eup %2121 }
 0x23e   : > { %v1292_v16 = vmul.f32 %v2122_v58, %v1006_v48  ;;  %v1524_v29 = vsel %vm1523_vm6, %v2120_v43, %v1520_v47  ;;  %v2928_v52 = vpop.xlane.xlu1 %1023  ;;  %v2930_v11 = vpop.xlane.xlu2 %1037  ;;  %vm1297_vm11 = vweird.f32 %v2122_v58 }
 0x23f   : > { %v1529_v23 = vsel %vm1526_vm7, %v1528_v10, %v1524_v29  ;;  %2123 = vrcp.f32 %v2928_v52  ;;  %v1211_v21 = vpop.f32.mrf.mxu3  ;;  %vm1298_vm13 = vmor %vm1296_vm12, %vm1297_vm11  ;;  %v1435_v26 = vand.u32 2147483647, %v2928_v52  ;;  %v1540_v14 = vand.u32 2147483647, %v2930_v11 }
 0x240   : > { %v1293_v62 = vsub.f32 1.0, %v1292_v16  ;;  %v1530_v63 = vmul.f32 1.3333334, %v1529_v23  ;;  %2125 = vrcp.f32 %v2930_v11  ;;  %v1644_v28 = vmul.f32 %v1410_v60, %v1211_v21 }
 0x241   : > { %v1542_v43 = vand.u32 2147483648, %v2930_v11  ;;  %v1437_v45 = vand.u32 2147483648, %v2928_v52  ;;  %vm1431_vm2 = vweird.f32 %v2928_v52  ;;  %vm1536_vm3 = vweird.f32 %v2930_v11 }
 0x242   : > { %v1294_v22 = vmul.f32 %v2122_v58, %v1293_v62  ;;  %v1652_v6 = vmul.f32 %v1530_v63, %v1252_v44  ;;  %1668 = vst.msk [vmem:[%s2904_s27 + $0x40] sm:$0xff] %vm543_vm0, %v1644_v28  ;;  %vm2966_vm4 = vcmp.eq.f32.partialorder %v1540_v14, 8.507059e+37  ;;  %vm2970_vm5 = vcmp.eq.f32.partialorder %v1435_v26, 8.507059e+37 }
 0x243   : > { %v1543_v18 = vor.u32 1.1754944e-38, %v1542_v43  ;;  %v1438_v53 = vor.u32 1.1754944e-38, %v1437_v45  ;;  %v1261_v43 = vpop.f32.mrf.mxu1 }
 0x244   : > { %v1295_v25 = vadd.f32 %v2122_v58, %v1294_v22  ;;  %1676 = vst.msk [vmem:[%s2904_s27 + $0x80] sm:$0xff] %vm543_vm0, %v1652_v6 }
 0x245   : > { %v2124_v27 = vpop.eup %2123 }
 0x246   : > { %v2126_v4 = vpop.eup %2125  ;;  %v1299_v0 = vsel %vm1298_vm13, %v2122_v58, %v1295_v25  ;;  %v1427_v35 = vmul.f32 %v2124_v27, %v2928_v52  ;;  %v2948_v12 = vpop.xlane.xlu1 %1041  ;;  %vm1432_vm15 = vweird.f32 %v2124_v27 }
 0x247   : > { %v1304_v3 = vsel %vm1301_vm14, %v1303_v24, %v1299_v0  ;;  %v1532_v61 = vmul.f32 %v2126_v4, %v2930_v11  ;;  %v2951_v9 = vpop.xlane.xlu2 %1007  ;;  %2127 = vrcp.f32 %v2948_v12  ;;  %v1214_v41 = vpop.f32.mrf.mxu3  ;;  %vm1537_vm1 = vweird.f32 %v2126_v4  ;;  %vm1433_vm7 = vmor %vm1431_vm2, %vm1432_vm15 }
 0x248   : > { %v1305_v40 = vmul.f32 1.3333334, %v1304_v3  ;;  %v1428_v34 = vsub.f32 1.0, %v1427_v35  ;;  %2129 = vrcp.f32 %v2951_v9  ;;  %v1645_v42 = vmul.f32 %v1425_v30, %v1214_v41  ;;  %vm1538_vm8 = vmor %vm1536_vm3, %vm1537_vm1 }
 0x249   : > { %v1533_v15 = vsub.f32 1.0, %v1532_v61  ;;  %vm1566_vm6 = vweird.f32 %v2948_v12  ;;  %v1315_v7 = vand.u32 2147483647, %v2951_v9  ;;  %v1317_v47 = vand.u32 2147483648, %v2951_v9  ;;  %v1255_v17 = vpop.f32.mrf.mxu0 }
 0x24a   : > { %v1637_v46 = vmul.f32 %v1305_v40, %v2908_v5  ;;  %v1429_v48 = vmul.f32 %v2124_v27, %v1428_v34  ;;  %1669 = vst.msk [vmem:[%s2904_s27 + $0x48] sm:$0xff] %vm543_vm0, %v1645_v42  ;;  %v1570_v37 = vand.u32 2147483647, %v2948_v12  ;;  %v1572_v62 = vand.u32 2147483648, %v2948_v12 }
 0x24b   : > { %v1534_v49 = vmul.f32 %v2126_v4, %v1533_v15  ;;  %vm1311_vm10 = vweird.f32 %v2951_v9  ;;  %vm2996_vm12 = vcmp.eq.f32.partialorder %v1315_v7, 8.507059e+37  ;;  %v1318_v8 = vor.u32 1.1754944e-38, %v1317_v47 }
 0x24c   : > { %1661 = vst.msk [vmem:[%s2904_s27 + $0x8] sm:$0xff] %vm543_vm0, %v1637_v46  ;;  %v1430_v13 = vadd.f32 %v2124_v27, %v1429_v48  ;;  %vm3000_vm13 = vcmp.eq.f32.partialorder %v1570_v37, 8.507059e+37 }
 0x24d   : > { %v2128_v5 = vpop.eup %2127  ;;  %v1535_v51 = vadd.f32 %v2126_v4, %v1534_v49 }
 0x24e   : > { %v2130_v54 = vpop.eup %2129  ;;  %v1562_v55 = vmul.f32 %v2128_v5, %v2948_v12  ;;  %v1434_v56 = vsel %vm1433_vm7, %v2124_v27, %v1430_v13  ;;  %v2979_v58 = vpop.xlane.xlu1 %1011  ;;  %vm1567_vm9 = vweird.f32 %v2128_v5  ;;  %v1573_v27 = vor.u32 1.1754944e-38, %v1572_v62 }
 0x24f   : > { %v1307_v10 = vmul.f32 %v2130_v54, %v2951_v9  ;;  %v1539_v59 = vsel %vm1538_vm8, %v2126_v4, %v1535_v51  ;;  %v2983_v16 = vpop.xlane.xlu2 %1025  ;;  %v1439_v29 = vsel %vm2970_vm5, %v1438_v53, %v1434_v56  ;;  %v2987_v52 = vpop.xlane.xlu0 %1039  ;;  %vm1312_vm11 = vweird.f32 %v2130_v54  ;;  %vm1568_vm14 = vmor %vm1566_vm6, %vm1567_vm9 }
 0x250   : > { %v1563_v23 = vsub.f32 1.0, %v1562_v55  ;;  %v1544_v11 = vsel %vm2966_vm4, %v1543_v18, %v1539_v59  ;;  %2131 = vrcp.f32 %v2983_v16  ;;  %v1440_v60 = vmul.f32 1.3333334, %v1439_v29  ;;  %v1217_v21 = vpop.f32.mrf.mxu3  ;;  %vm1313_vm15 = vmor %vm1311_vm10, %vm1312_vm11 }
 0x251   : > { %v1308_v57 = vsub.f32 1.0, %v1307_v10  ;;  %v1545_v63 = vmul.f32 1.3333334, %v1544_v11  ;;  %2133 = vrcp.f32 %v2987_v52  ;;  %v1345_v24 = vand.u32 2147483647, %v2979_v58 }
 0x252   : > { %v1564_v2 = vmul.f32 %v2128_v5, %v1563_v23  ;;  %v1646_v44 = vmul.f32 %v1440_v60, %v1217_v21  ;;  %2135 = vrcp.f32 %v2979_v58  ;;  %v1347_v4 = vand.u32 2147483648, %v2979_v58 }
 0x253   : > { %v1309_v28 = vmul.f32 %v2130_v54, %v1308_v57  ;;  %v1653_v19 = vmul.f32 %v1545_v63, %v1255_v17  ;;  %vm1341_vm1 = vweird.f32 %v2979_v58  ;;  %vm1446_vm2 = vweird.f32 %v2983_v16 }
 0x254   : > { %v1565_v6 = vadd.f32 %v2128_v5, %v1564_v2  ;;  %1670 = vst.msk [vmem:[%s2904_s27 + $0x50] sm:$0xff] %vm543_vm0, %v1646_v44  ;;  %v1450_v30 = vand.u32 2147483647, %v2983_v16  ;;  %v1452_v40 = vand.u32 2147483648, %v2983_v16  ;;  %vm3033_vm3 = vcmp.eq.f32.partialorder %v1345_v24, 8.507059e+37 }
 0x255   : > { %v1310_v25 = vadd.f32 %v2130_v54, %v1309_v28  ;;  %1677 = vst.msk [vmem:[%s2904_s27 + $0x88] sm:$0xff] %vm543_vm0, %v1653_v19  ;;  %v1348_v1 = vor.u32 1.1754944e-38, %v1347_v4  ;;  %vm1551_vm4 = vweird.f32 %v2987_v52  ;;  %v1557_v59 = vand.u32 2147483648, %v2987_v52 }
 0x256   : > { %v2132_v0 = vpop.eup %2131  ;;  %v1569_v35 = vsel %vm1568_vm14, %v2128_v5, %v1565_v6  ;;  %v1555_v5 = vand.u32 2147483647, %v2987_v52  ;;  %vm1451_vm7 = vcmp.eq.f32.partialorder %v1450_v30, 8.507059e+37 }
 0x257   : > { %v3017_v12 = vpop.eup %2133  ;;  %v1314_v3 = vsel %vm1313_vm15, %v2130_v54, %v1310_v25  ;;  %v1574_v61 = vsel %vm3000_vm13, %v1573_v27, %v1569_v35  ;;  %v1442_v26 = vmul.f32 %v2132_v0, %v2983_v16  ;;  %v3023_v34 = vpop.xlane.xlu2 %1043  ;;  %vm1447_vm5 = vweird.f32 %v2132_v0 }
 0x258   : > { %v2136_v9 = vpop.eup %2135  ;;  %v1319_v41 = vsel %vm2996_vm12, %v1318_v8, %v1314_v3  ;;  %v1575_v14 = vmul.f32 1.3333334, %v1574_v61  ;;  %v1547_v15 = vmul.f32 %v3017_v12, %v2987_v52  ;;  %2137 = vrcp.f32 %v3023_v34  ;;  %v3030_v42 = vpop.xlane.xlu0 %1009  ;;  %vm1448_vm8 = vmor %vm1446_vm2, %vm1447_vm5 }
 0x259   : > { %v1320_v45 = vmul.f32 1.3333334, %v1319_v41  ;;  %v1443_v46 = vsub.f32 1.0, %v1442_v26  ;;  %v1337_v48 = vmul.f32 %v2136_v9, %v2979_v58  ;;  %v3040_v54 = vpop.xlane.xlu1 %1029  ;;  %vm1342_vm6 = vweird.f32 %v2136_v9  ;;  %v1220_v22 = vpop.f32.mrf.mxu3 }
 0x25a   : > { %v1655_v13 = vmul.f32 %v1575_v14, %v1261_v43  ;;  %v1548_v39 = vsub.f32 1.0, %v1547_v15  ;;  %v1585_v47 = vand.u32 2147483647, %v3023_v34  ;;  %2139 = vrcp.f32 %v3030_v42  ;;  %vm3058_vm10 = vmor %vm1341_vm1, %vm1342_vm6  ;;  %v1258_v14 = vpop.f32.mrf.mxu0 }
 0x25b   : > { %v1638_v51 = vmul.f32 %v1320_v45, %v2910_v31  ;;  %v1444_v18 = vmul.f32 %v2132_v0, %v1443_v46  ;;  %v1338_v53 = vsub.f32 1.0, %v1337_v48  ;;  %v1453_v31 = vor.u32 1.1754944e-38, %v1452_v40 }
 0x25c   : > { %1679 = vst.msk [vmem:[%s2904_s27 + $0x98] sm:$0xff] %vm543_vm0, %v1655_v13  ;;  %v1549_v7 = vmul.f32 %v3017_v12, %v1548_v39  ;;  %2141 = vrcp.f32 %v3040_v54  ;;  %vm1552_vm9 = vweird.f32 %v3017_v12  ;;  %vm1581_vm11 = vweird.f32 %v3023_v34 }
 0x25d   : > { %1662 = vst.msk [vmem:[%s2904_s27 + $0x10] sm:$0xff] %vm543_vm0, %v1638_v51  ;;  %v1339_v55 = vmul.f32 %v2136_v9, %v1338_v53  ;;  %v1445_v56 = vadd.f32 %v2132_v0, %v1444_v18  ;;  %vm3066_vm13 = vcmp.eq.f32.partialorder %v1585_v47, 8.507059e+37  ;;  %v1587_v63 = vand.u32 2147483648, %v3023_v34  ;;  %vm3073_vm14 = vmor %vm1551_vm4, %vm1552_vm9  ;;  %v1264_v51 = vpop.f32.mrf.mxu1 }
 0x25e   : > { %v2138_v10 = vpop.eup %2137  ;;  %v1550_v37 = vadd.f32 %v3017_v12, %v1549_v7  ;;  %vm1556_vm15 = vcmp.eq.f32.partialorder %v1555_v5, 8.507059e+37  ;;  %v1558_v8 = vor.u32 1.1754944e-38, %v1557_v59  ;;  %vm1326_vm1 = vweird.f32 %v3030_v42 }
 0x25f   : > { %v1340_v29 = vadd.f32 %v2136_v9, %v1339_v55  ;;  %v1449_v11 = vsel %vm1448_vm8, %v2132_v0, %v1445_v56  ;;  %v1577_v16 = vmul.f32 %v2138_v10, %v3023_v34  ;;  %v3064_v60 = vpop.xlane.xlu2 %1013  ;;  %vm1582_vm12 = vweird.f32 %v2138_v10 }
 0x260   : > { %v1454_v57 = vsel %vm1451_vm7, %v1453_v31, %v1449_v11  ;;  %v1554_v44 = vsel %vm3073_vm14, %v3017_v12, %v1550_v37  ;;  %v3082_v28 = vpop.xlane.xlu0 %1027  ;;  %v2140_v19 = vpop.eup %2139  ;;  %2143 = vrcp.f32 %v3064_v60  ;;  %v1588_v4 = vor.u32 1.1754944e-38, %v1587_v63  ;;  %vm1583_vm2 = vmor %vm1581_vm11, %vm1582_vm12 }
 0x261   : > { %v1344_v21 = vsel %vm3058_vm10, %v2136_v9, %v1340_v29  ;;  %v1455_v2 = vmul.f32 1.3333334, %v1454_v57  ;;  %v1578_v17 = vsub.f32 1.0, %v1577_v16  ;;  %v1322_v27 = vmul.f32 %v2140_v19, %v3030_v42  ;;  %v3105_v43 = vpop.xlane.xlu1 %1017  ;;  %v3132_v37 = vpop.f32.mrf.mxu3 }
 0x262   : > { %v1349_v52 = vsel %vm3033_vm3, %v1348_v1, %v1344_v21  ;;  %v3088_v24 = vpop.eup %2141  ;;  %v1330_v0 = vand.u32 2147483647, %v3030_v42  ;;  %v1559_v35 = vsel %vm1556_vm15, %v1558_v8, %v1554_v44  ;;  %vm1327_vm3 = vweird.f32 %v2140_v19 }
 0x263   : > { %v1350_v6 = vmul.f32 1.3333334, %v1349_v52  ;;  %v1647_v20 = vmul.f32 %v1455_v2, %v1220_v22  ;;  %v1579_v25 = vmul.f32 %v2138_v10, %v1578_v17  ;;  %v1323_v3 = vsub.f32 1.0, %v1322_v27  ;;  %vm1328_vm5 = vmor %vm1326_vm1, %vm1327_vm3 }
 0x264   : > { %v1472_v61 = vmul.f32 %v3088_v24, %v3040_v54  ;;  %v1332_v26 = vand.u32 2147483648, %v3030_v42  ;;  %v1560_v40 = vmul.f32 1.3333334, %v1559_v35  ;;  %2145 = vrcp.f32 %v3082_v28 }
 0x265   : > { %v1640_v30 = vmul.f32 %v1350_v6, %v2914_v36  ;;  %1671 = vst.msk [vmem:[%s2904_s27 + $0x58] sm:$0xff] %vm543_vm0, %v1647_v20  ;;  %v1580_v12 = vadd.f32 %v2138_v10, %v1579_v25  ;;  %v1324_v9 = vmul.f32 %v2140_v19, %v1323_v3  ;;  %v1360_v15 = vand.u32 2147483647, %v3064_v60 }
 0x266   : > { %v1473_v41 = vsub.f32 1.0, %v1472_v61  ;;  %v2144_v45 = vpop.eup %2143  ;;  %vm3109_vm4 = vcmp.eq.f32.partialorder %v1330_v0, 8.507059e+37  ;;  %v1654_v48 = vmul.f32 %v1560_v40, %v1258_v14  ;;  %v1362_v49 = vand.u32 2147483648, %v3064_v60 }
 0x267   : > { %1664 = vst.msk [vmem:[%s2904_s27 + $0x20] sm:$0xff] %vm543_vm0, %v1640_v30  ;;  %v1584_v36 = vsel %vm1583_vm2, %v2138_v10, %v1580_v12  ;;  %v1325_v13 = vadd.f32 %v2140_v19, %v1324_v9  ;;  %v1352_v5 = vmul.f32 %v2144_v45, %v3064_v60  ;;  %v1333_v18 = vor.u32 1.1754944e-38, %v1332_v26  ;;  %v3139_v62 = vpop.xlane.xlu2 %1031 }
 0x268   : > { %v1589_v34 = vsel %vm3066_vm13, %v1588_v4, %v1584_v36  ;;  %v1474_v39 = vmul.f32 %v3088_v24, %v1473_v41  ;;  %1678 = vst.msk [vmem:[%s2904_s27 + $0x90] sm:$0xff] %vm543_vm0, %v1654_v48  ;;  %vm1356_vm6 = vweird.f32 %v3064_v60  ;;  %v1465_v53 = vand.u32 2147483647, %v3082_v28  ;;  %v3128_v31 = vpop.xlane.xlu0 %1015 }
 0x269   : > { %v1590_v1 = vmul.f32 1.3333334, %v1589_v34  ;;  %2147 = vrcp.f32 %v3105_v43  ;;  %v1329_v47 = vsel %vm1328_vm5, %v2140_v19, %v1325_v13  ;;  %v1353_v55 = vsub.f32 1.0, %v1352_v5  ;;  %v3171_v25 = vpop.xlane.xlu1 %1047  ;;  %v1226_v14 = vpop.f32.mrf.mxu3 }
 0x26a   : > { %vm3124_vm7 = vcmp.eq.f32.partialorder %v1360_v15, 8.507059e+37  ;;  %v2146_v42 = vpop.eup %2145  ;;  %v1334_v10 = vsel %vm3109_vm4, %v1333_v18, %v1329_v47  ;;  %vm1357_vm8 = vweird.f32 %v2144_v45  ;;  %v1363_v59 = vor.u32 1.1754944e-38, %v1362_v49 }
 0x26b   : > { %v1656_v7 = vmul.f32 %v1590_v1, %v1264_v51  ;;  %v1467_v29 = vand.u32 2147483648, %v3082_v28  ;;  %v1335_v23 = vmul.f32 1.3333334, %v1334_v10  ;;  %v1354_v11 = vmul.f32 %v2144_v45, %v1353_v55  ;;  %vm3152_vm13 = vmor %vm1356_vm6, %vm1357_vm8 }
 0x26c   : > { %v1457_v16 = vmul.f32 %v2146_v42, %v3082_v28  ;;  %v1475_v57 = vadd.f32 %v3088_v24, %v1474_v39  ;;  %vm1461_vm9 = vweird.f32 %v3082_v28  ;;  %vm3142_vm10 = vcmp.eq.f32.partialorder %v1465_v53, 8.507059e+37 }
 0x26d   : > { %1680 = vst.msk [vmem:[%s2904_s27 + $0xa0] sm:$0xff] %vm543_vm0, %v1656_v7  ;;  %vm1476_vm11 = vweird.f32 %v3040_v54  ;;  %vm1477_vm12 = vweird.f32 %v3088_v24  ;;  %v1639_v58 = vmul.f32 %v1335_v23, %v2912_v33  ;;  %v1355_v21 = vadd.f32 %v2144_v45, %v1354_v11 }
 0x26e   : > { %v1458_v17 = vsub.f32 1.0, %v1457_v16  ;;  %v1480_v44 = vand.u32 2147483647, %v3040_v54  ;;  %vm1462_vm14 = vweird.f32 %v2146_v42  ;;  %v1468_v52 = vor.u32 1.1754944e-38, %v1467_v29  ;;  %vm3157_vm15 = vmor %vm1476_vm11, %vm1477_vm12 }
 0x26f   : > { %v2148_v19 = vpop.eup %2147  ;;  %v1482_v33 = vand.u32 2147483648, %v3040_v54  ;;  %2149 = vrcp.f32 %v3139_v62  ;;  %1663 = vst.msk [vmem:[%s2904_s27 + $0x18] sm:$0xff] %vm543_vm0, %v1639_v58  ;;  %v1359_v60 = vsel %vm3152_vm13, %v2144_v45, %v1355_v21  ;;  %v1479_v20 = vsel %vm3157_vm15, %v3088_v24, %v1475_v57  ;;  %vm1463_vm2 = vmor %vm1461_vm9, %vm1462_vm14  ;;  %v3203_v51 = vpop.xlane.xlu2 %1049 }
 0x270   : > { %v1459_v8 = vmul.f32 %v2146_v42, %v1458_v17  ;;  %v1382_v6 = vmul.f32 %v2148_v19, %v3105_v43  ;;  %v1364_v27 = vsel %vm3124_vm7, %v1363_v59, %v1359_v60  ;;  %v1390_v54 = vand.u32 2147483647, %v3105_v43  ;;  %v3183_v36 = vpop.xlane.xlu0 %1033 }
 0x271   : > { %v1483_v4 = vor.u32 1.1754944e-38, %v1482_v33  ;;  %2151 = vrcp.f32 %v3128_v31  ;;  %v1365_v0 = vmul.f32 1.3333334, %v1364_v27  ;;  %vm1481_vm1 = vcmp.eq.f32.partialorder %v1480_v44, 8.507059e+37  ;;  %v1229_v60 = vpop.f32.mrf.mxu3 }
 0x272   : > { %v1460_v35 = vadd.f32 %v2146_v42, %v1459_v8  ;;  %v1383_v30 = vsub.f32 1.0, %v1382_v6  ;;  %vm1387_vm3 = vweird.f32 %v2148_v19  ;;  %v1392_v24 = vand.u32 2147483648, %v3105_v43 }
 0x273   : > { %v1484_v12 = vsel %vm1481_vm1, %v1483_v4, %v1479_v20  ;;  %2153 = vrcp.f32 %v3171_v25  ;;  %v1641_v3 = vmul.f32 %v1365_v0, %v2916_v38  ;;  %vm1386_vm4 = vweird.f32 %v3105_v43 }
 0x274   : > { %v1464_v61 = vsel %vm1463_vm2, %v2146_v42, %v1460_v35  ;;  %v1384_v26 = vmul.f32 %v2148_v19, %v1383_v30  ;;  %v1485_v40 = vmul.f32 1.3333334, %v1484_v12  ;;  %vm3188_vm5 = vcmp.eq.f32.partialorder %v1390_v54, 8.507059e+37  ;;  %vm1388_vm6 = vmor %vm1386_vm4, %vm1387_vm3  ;;  %v1270_v35 = vpop.f32.mrf.mxu2 }
 0x275   : > { %v2150_v9 = vpop.eup %2149  ;;  %v1469_v41 = vsel %vm3142_vm10, %v1468_v52, %v1464_v61  ;;  %1665 = vst.msk [vmem:[%s2904_s27 + $0x28] sm:$0xff] %vm543_vm0, %v1641_v3  ;;  %v1393_v48 = vor.u32 1.1754944e-38, %v1392_v24  ;;  %vm1371_vm7 = vweird.f32 %v3128_v31  ;;  %v1375_v43 = vand.u32 2147483647, %v3128_v31 }
 0x276   : > { %v1470_v38 = vmul.f32 1.3333334, %v1469_v41  ;;  %v1385_v15 = vadd.f32 %v2148_v19, %v1384_v26  ;;  %v1649_v45 = vmul.f32 %v1485_v40, %v1226_v14  ;;  %v1487_v34 = vmul.f32 %v2150_v9, %v3139_v62 }
 0x277   : > { %v2152_v46 = vpop.eup %2151  ;;  %v1377_v49 = vand.u32 2147483648, %v3128_v31  ;;  %v1615_v7 = vand.u32 2147483647, %v3171_v25  ;;  %vm1492_vm8 = vweird.f32 %v2150_v9  ;;  %v1495_v47 = vand.u32 2147483647, %v3139_v62 }
 0x278   : > { %v1648_v1 = vmul.f32 %v1470_v38, %v3132_v37  ;;  %v1389_v13 = vsel %vm1388_vm6, %v2148_v19, %v1385_v15  ;;  %1673 = vst.msk [vmem:[%s2904_s27 + $0x68] sm:$0xff] %vm543_vm0, %v1649_v45  ;;  %v1488_v39 = vsub.f32 1.0, %v1487_v34  ;;  %v1367_v5 = vmul.f32 %v2152_v46, %v3128_v31 }
 0x279   : > { %v2154_v18 = vpop.eup %2153  ;;  %v1394_v53 = vsel %vm3188_vm5, %v1393_v48, %v1389_v13  ;;  %vm1372_vm9 = vweird.f32 %v2152_v46  ;;  %vm1491_vm10 = vweird.f32 %v3139_v62  ;;  %v1497_v37 = vand.u32 2147483648, %v3139_v62  ;;  %v3221_v62 = vpop.xlane.xlu0 %1045 }
 0x27a   : > { %1672 = vst.msk [vmem:[%s2904_s27 + $0x60] sm:$0xff] %vm543_vm0, %v1648_v1  ;;  %v1395_v55 = vmul.f32 1.3333334, %v1394_v53  ;;  %v1489_v56 = vmul.f32 %v2150_v9, %v1488_v39  ;;  %v1368_v42 = vsub.f32 1.0, %v1367_v5  ;;  %v1607_v10 = vmul.f32 %v2154_v18, %v3171_v25  ;;  %vm1493_vm12 = vmor %vm1491_vm10, %vm1492_vm8 }
 0x27b   : > { %2155 = vrcp.f32 %v3203_v51  ;;  %vm1612_vm11 = vweird.f32 %v2154_v18  ;;  %v1617_v16 = vand.u32 2147483648, %v3171_v25  ;;  %vm1496_vm13 = vcmp.eq.f32.partialorder %v1495_v47, 8.507059e+37  ;;  %vm1373_vm14 = vmor %vm1371_vm7, %vm1372_vm9  ;;  %v1232_v47 = vpop.f32.mrf.mxu3 }
 0x27c   : > { %v1643_v59 = vmul.f32 %v1395_v55, %v2924_v50  ;;  %v1369_v29 = vmul.f32 %v2152_v46, %v1368_v42  ;;  %v1608_v23 = vsub.f32 1.0, %v1607_v10  ;;  %v1490_v11 = vadd.f32 %v2150_v9, %v1489_v56  ;;  %v1273_v39 = vpop.f32.mrf.mxu2 }
 0x27d   : > { %v1498_v57 = vor.u32 1.1754944e-38, %v1497_v37  ;;  %2157 = vrcp.f32 %v3183_v36  ;;  %v1378_v50 = vor.u32 1.1754944e-38, %v1377_v49  ;;  %vm1611_vm15 = vweird.f32 %v3171_v25  ;;  %v1267_v37 = vpop.f32.mrf.mxu1 }
 0x27e   : > { %1667 = vst.msk [vmem:[%s2904_s27 + $0x38] sm:$0xff] %vm543_vm0, %v1643_v59  ;;  %v1370_v63 = vadd.f32 %v2152_v46, %v1369_v29  ;;  %v1609_v58 = vmul.f32 %v2154_v18, %v1608_v23  ;;  %v1494_v21 = vsel %vm1493_vm12, %v2150_v9, %v1490_v11  ;;  %vm1376_vm1 = vcmp.eq.f32.partialorder %v1375_v43, 8.507059e+37  ;;  %vm1613_vm2 = vmor %vm1611_vm15, %vm1612_vm11  ;;  %v1768_v29 = vld [vmem:[%s2904_s27] sm:$0xff] (%p2244_p5)  ;;  %v1770_v23 = vld [vmem:[%s2904_s27 + $0x8] sm:$0xff] (%p2244_p5) }
 0x27f   : > { %v1499_v2 = vsel %vm1496_vm13, %v1498_v57, %v1494_v21  ;;  %vm1616_vm3 = vcmp.eq.f32.partialorder %v1615_v7, 8.507059e+37  ;;  %v1618_v33 = vor.u32 1.1754944e-38, %v1617_v16  ;;  %2159 = vrcp.f32 %v3221_v62  ;;  %v1772_v11 = vld [vmem:[%s2904_s27 + $0x10] sm:$0xff] (%p2244_p5)  ;;  %1769 = vst [vmem:[%s3263_s24] sm:$0xff] (%p2244_p5), %v1768_v29  ;;  %v1774_v16 = vld [vmem:[%s2904_s27 + $0x18] sm:$0xff] (%p2244_p5)  ;;  %v1776_v57 = vld [vmem:[%s2904_s27 + $0x20] sm:$0xff] (%p2244_p5) }
 0x280   : > { %v1374_v17 = vsel %vm1373_vm14, %v2152_v46, %v1370_v63  ;;  %v1610_v44 = vadd.f32 %v2154_v18, %v1609_v58  ;;  %v1500_v19 = vmul.f32 1.3333334, %v1499_v2  ;;  %v1632_v30 = vand.u32 2147483648, %v3203_v51  ;;  %1771 = vst [vmem:[%s3263_s24 + $0x8] sm:$0xff] (%p2244_p5), %v1770_v23  ;;  %v1778_v63 = vld [vmem:[%s2904_s27 + $0x28] sm:$0xff] (%p2244_p5)  ;;  %v1788_v2 = vld [vmem:[%s2904_s27 + $0x50] sm:$0xff] (%p2244_p5) }
 0x281   : > { %v2156_v52 = vpop.eup %2155  ;;  %v1379_v22 = vsel %vm1376_vm1, %v1378_v50, %v1374_v17  ;;  %v1630_v61 = vand.u32 2147483647, %v3203_v51  ;;  %vm1626_vm5 = vweird.f32 %v3203_v51  ;;  %v1510_v38 = vand.u32 2147483647, %v3183_v36  ;;  %1773 = vst [vmem:[%s3263_s24 + $0x10] sm:$0xff] (%p2244_p5), %v1772_v11  ;;  %v1786_v50 = vld [vmem:[%s2904_s27 + $0x48] sm:$0xff] (%p2244_p5) }
 0x282   : > { %v1380_v31 = vmul.f32 1.3333334, %v1379_v22  ;;  %v1614_v8 = vsel %vm1613_vm2, %v2154_v18, %v1610_v44  ;;  %v1650_v6 = vmul.f32 %v1500_v19, %v1229_v60  ;;  %v1622_v20 = vmul.f32 %v2156_v52, %v3203_v51  ;;  %1775 = vst [vmem:[%s3263_s24 + $0x18] sm:$0xff] (%p2244_p5), %v1774_v16  ;;  %v1790_v17 = vld [vmem:[%s2904_s27 + $0x58] sm:$0xff] (%p2244_p5)  ;;  %v1792_v44 = vld [vmem:[%s2904_s27 + $0x60] sm:$0xff] (%p2244_p5)  ;;  %v1794_v19 = vld [vmem:[%s2904_s27 + $0x68] sm:$0xff] (%p2244_p5) }
 0x283   : > { %v1619_v25 = vsel %vm1616_vm3, %v1618_v33, %v1614_v8  ;;  %v2158_v27 = vpop.eup %2157  ;;  %vm1627_vm4 = vweird.f32 %v2156_v52  ;;  %v1633_v28 = vor.u32 1.1754944e-38, %v1632_v30  ;;  %vm1631_vm8 = vcmp.eq.f32.partialorder %v1630_v61, 8.507059e+37  ;;  %1777 = vst [vmem:[%s3263_s24 + $0x20] sm:$0xff] (%p2244_p5), %v1776_v57  ;;  %v1800_v33 = vld [vmem:[%s2904_s27 + $0x80] sm:$0xff] (%p2244_p5)  ;;  %v1802_v60 = vld [vmem:[%s2904_s27 + $0x88] sm:$0xff] (%p2244_p5)  ;;  %v1806_v8 = vld [vmem:[%s2904_s27 + $0x98] sm:$0xff] (%p2244_p5) }
 0x284   : > { %v1642_v54 = vmul.f32 %v1380_v31, %v2920_v32  ;;  %v1620_v4 = vmul.f32 1.3333334, %v1619_v25  ;;  %1674 = vst.msk [vmem:[%s2904_s27 + $0x70] sm:$0xff] %vm543_vm0, %v1650_v6  ;;  %v1623_v0 = vsub.f32 1.0, %v1622_v20  ;;  %v1502_v24 = vmul.f32 %v2158_v27, %v3183_v36  ;;  %vm1628_vm6 = vmor %vm1626_vm5, %vm1627_vm4  ;;  %v1804_v31 = vld [vmem:[%s2904_s27 + $0x90] sm:$0xff] (%p2244_p5)  ;;  %v1808_v6 = vld [vmem:[%s2904_s27 + $0xa0] sm:$0xff] (%p2244_p5) }
 0x285   : > { %v2160_v26 = vpop.eup %2159  ;;  %v1512_v32 = vand.u32 2147483648, %v3183_v36  ;;  %vm1507_vm7 = vweird.f32 %v2158_v27  ;;  %vm1506_vm9 = vweird.f32 %v3183_v36  ;;  %v1602_v43 = vand.u32 2147483648, %v3221_v62  ;;  %v1782_v21 = vld [vmem:[%s2904_s27 + $0x38] sm:$0xff] (%p2244_p5)  ;;  %1779 = vst [vmem:[%s3263_s24 + $0x28] sm:$0xff] (%p2244_p5), %v1778_v63 }
 0x286   : > { %1666 = vst.msk [vmem:[%s2904_s27 + $0x30] sm:$0xff] %vm543_vm0, %v1642_v54  ;;  %v1658_v12 = vmul.f32 %v1620_v4, %v1270_v35  ;;  %v1624_v3 = vmul.f32 %v2156_v52, %v1623_v0  ;;  %v1503_v40 = vsub.f32 1.0, %v1502_v24  ;;  %v1592_v41 = vmul.f32 %v2160_v26, %v3221_v62  ;;  %vm1508_vm10 = vmor %vm1506_vm9, %vm1507_vm7 }
 0x287   : > { %v1513_v48 = vor.u32 1.1754944e-38, %v1512_v32  ;;  %vm1597_vm11 = vweird.f32 %v2160_v26  ;;  %v1600_v13 = vand.u32 2147483647, %v3221_v62  ;;  %vm1511_vm12 = vcmp.eq.f32.partialorder %v1510_v38, 8.507059e+37  ;;  %1783 = vst [vmem:[%s3263_s24 + $0x38] sm:$0xff] (%p2244_p5), %v1782_v21 }
 0x288   : > { %1682 = vst.msk [vmem:[%s2904_s27 + $0xb0] sm:$0xff] %vm543_vm0, %v1658_v12  ;;  %v1625_v9 = vadd.f32 %v2156_v52, %v1624_v3  ;;  %v1504_v14 = vmul.f32 %v2158_v27, %v1503_v40  ;;  %v1593_v45 = vsub.f32 1.0, %v1592_v41  ;;  %vm1596_vm13 = vweird.f32 %v3221_v62  ;;  %v1784_v62 = vld [vmem:[%s2904_s27 + $0x40] sm:$0xff] (%p2244_p5) }
 0x289   : > { %vm1598_vm14 = vmor %vm1596_vm13, %vm1597_vm11  ;;  %v1603_v7 = vor.u32 1.1754944e-38, %v1602_v43  ;;  %vm1601_vm15 = vcmp.eq.f32.partialorder %v1600_v13, 8.507059e+37  ;;  %1785 = vst [vmem:[%s3263_s24 + $0x80] sm:$0xff] (%p2244_p5), %v1784_v62 }
 0x28a   : > { %v1629_v15 = vsel %vm1628_vm6, %v2156_v52, %v1625_v9  ;;  %v1505_v46 = vadd.f32 %v2158_v27, %v1504_v14  ;;  %v1594_v1 = vmul.f32 %v2160_v26, %v1593_v45  ;;  %1787 = vst [vmem:[%s3263_s24 + $0x88] sm:$0xff] (%p2244_p5), %v1786_v50 }
 0x28b   : > { %v1634_v34 = vsel %vm1631_vm8, %v1633_v28, %v1629_v15  ;;  %1789 = vst [vmem:[%s3263_s24 + $0x90] sm:$0xff] (%p2244_p5), %v1788_v2  ;;  %v1796_v52 = vld [vmem:[%s2904_s27 + $0x70] sm:$0xff] (%p2244_p5) }
 0x28c   : > { %v1635_v49 = vmul.f32 1.3333334, %v1634_v34  ;;  %v1509_v5 = vsel %vm1508_vm10, %v2158_v27, %v1505_v46  ;;  %v1595_v36 = vadd.f32 %v2160_v26, %v1594_v1  ;;  %1791 = vst [vmem:[%s3263_s24 + $0x98] sm:$0xff] (%p2244_p5), %v1790_v17 }
 0x28d   : > { %v1514_v18 = vsel %vm1511_vm12, %v1513_v48, %v1509_v5  ;;  %v1780_v58 = vld [vmem:[%s2904_s27 + $0x30] sm:$0xff] (%p2244_p5)  ;;  %1793 = vst [vmem:[%s3263_s24 + $0xa0] sm:$0xff] (%p2244_p5), %v1792_v44 }
 0x28e   : > { %v1659_v51 = vmul.f32 %v1635_v49, %v1273_v39  ;;  %v1515_v53 = vmul.f32 1.3333334, %v1514_v18  ;;  %v1599_v55 = vsel %vm1598_vm14, %v2160_v26, %v1595_v36  ;;  %1781 = vst [vmem:[%s3263_s24 + $0x30] sm:$0xff] (%p2244_p5), %v1780_v58 }
 0x28f   : > { %v1604_v42 = vsel %vm1601_vm15, %v1603_v7, %v1599_v55  ;;  %1795 = vst [vmem:[%s3263_s24 + $0xa8] sm:$0xff] (%p2244_p5), %v1794_v19  ;;  %v1812_v25 = vld [vmem:[%s2904_s27 + $0xb0] sm:$0xff] (%p2244_p5) }
 0x290   : > { %1683 = vst.msk [vmem:[%s2904_s27 + $0xb8] sm:$0xff] %vm543_vm0, %v1659_v51  ;;  %v1651_v56 = vmul.f32 %v1515_v53, %v1232_v47  ;;  %v1605_v10 = vmul.f32 1.3333334, %v1604_v42  ;;  %1690 = sbr.rel (!%p2244_p5) target bundleno = 669 (0x29d), region = 116 }
 0x291   : > { %1797 = vst [vmem:[%s3263_s24 + $0xb0] sm:$0xff] (%p2244_p5), %v1796_v52 }
 0x292   : > { %1675 = vst.msk [vmem:[%s2904_s27 + $0x78] sm:$0xff] %vm543_vm0, %v1651_v56  ;;  %v1657_v59 = vmul.f32 %v1605_v10, %v1267_v37 }
 0x293   : > { %1801 = vst [vmem:[%s3263_s24 + $0x100] sm:$0xff] (%p2244_p5), %v1800_v33 }
 0x294   : > { %1681 = vst.msk [vmem:[%s2904_s27 + $0xa8] sm:$0xff] %vm543_vm0, %v1657_v59 }
 0x295   : > { %1803 = vst [vmem:[%s3263_s24 + $0x108] sm:$0xff] %v1802_v60 }
 0x296   : > { %1805 = vst [vmem:[%s3263_s24 + $0x110] sm:$0xff] %v1804_v31 }
 0x297   : > { %1807 = vst [vmem:[%s3263_s24 + $0x118] sm:$0xff] %v1806_v8  ;;  %v1814_v27 = vld [vmem:[%s2904_s27 + $0xb8] sm:$0xff] }
 0x298   : > { %1809 = vst [vmem:[%s3263_s24 + $0x120] sm:$0xff] %v1808_v6 }
 0x299   : > { %v1798_v22 = vld [vmem:[%s2904_s27 + $0x78] sm:$0xff]  ;;  %1813 = vst [vmem:[%s3263_s24 + $0x130] sm:$0xff] %v1812_v25 }
 0x29a   : > { %1799 = vst [vmem:[%s3263_s24 + $0xb8] sm:$0xff] %v1798_v22 }
 0x29b   : > { %v1810_v20 = vld [vmem:[%s2904_s27 + $0xa8] sm:$0xff]  ;;  %1815 = vst [vmem:[%s3263_s24 + $0x138] sm:$0xff] %v1814_v27 }
 0x29c   : > { %1811 = vst [vmem:[%s3263_s24 + $0x128] sm:$0xff] %v1810_v20 }
 0x29d PF: > { %p11_p10 = scmp.ge.s32.totalorder %s2227_s19, 4   ;;  %s3358_s15 = smov %s2179_s16 }
 0x29e   : > { %s3359_s16 = smov %s2238_s22  ;;  %s3360_s17 = smov %s2227_s19 }
 0x29f   :  { %13 = sbr.rel (!%p11_p10) target bundleno = 2 (0x2), region = 193 }

</bundles_post_ra>
